<compile_context>
chip_gen: v7x
topology: tpu7x:2x2x1
jax: 0.10.0
libtpu: 0.0.40
codegen_flags: <defaults>
</compile_context>

<pallas_src>
import jax
import jax.numpy as jnp
import numpy as np
from jax.experimental import pallas as pl
from jax.experimental.pallas import tpu as pltpu

LANE = 128


def _round_up(x, m):
    return (x + m - 1) // m * m


def _lstm_recurrence_kernel(xg_ref, whh_ref, h_out_ref, h_scr, c_scr):
    """One grid step = t_blk timesteps of the serial LSTM recurrence.

    Per step: gates = xg[t] + h_{t-1} @ W_hh^T   (bf16 MXU, f32 accumulation)
              i/f/o via sigmoid(z) = 0.5*(tanh(z/2)+1)  (pre-scale baked into
              weights) -> one fused tanh over the whole (B, 4Hp) gate block.
    h/c live in fori_loop carries (vregs); scratch is touched once per grid step.
    """

    @pl.when(pl.program_id(0) == 0)
    def _():
        h_scr[...] = jnp.zeros_like(h_scr)
        c_scr[...] = jnp.zeros_like(c_scr)

    t_blk = xg_ref.shape[0]
    Hp = c_scr.shape[1]

    def step(t, carry):
        h_prev_bf16, c_prev = carry                        # (B, Hp) bf16 / f32
        gates = xg_ref[t] + jnp.dot(
            h_prev_bf16, whh_ref[...],
            preferred_element_type=jnp.float32)            # (B, 4Hp) f32
        # PyTorch gate order i, f, g, o; i/f/o pre-activations were pre-scaled
        # by 0.5 in the wrapper, g is unscaled -> single tanh covers all gates.
        t_all = jnp.tanh(gates)
        i_g = 0.5 * (t_all[:, 0 * Hp:1 * Hp] + 1.0)        # sigmoid(z_i)
        f_g = 0.5 * (t_all[:, 1 * Hp:2 * Hp] + 1.0)        # sigmoid(z_f)
        g_g = t_all[:, 2 * Hp:3 * Hp]                      # tanh(z_g)
        o_g = 0.5 * (t_all[:, 3 * Hp:4 * Hp] + 1.0)        # sigmoid(z_o)
        c_new = f_g * c_prev + i_g * g_g
        h_new = o_g * jnp.tanh(c_new)
        h_out_ref[t] = h_new                               # lane-dense f32 store
        # single f32->bf16 cast per step; feeds the next step's MXU op
        return h_new.astype(jnp.bfloat16), c_new

    h_last, c_last = jax.lax.fori_loop(
        0, t_blk, step, (h_scr[...], c_scr[...]), unroll=True)
    h_scr[...] = h_last
    c_scr[...] = c_last


def rnn_model_forward(x, w_ih, w_hh, b_ih, b_hh, w_out, b_out, *, t_block=16):
    """Matches torch: nn.LSTM(I, H, batch_first=True) -> nn.Linear(H, O).

    x: (B, T, I) f32 -> (B, T, O) f32.
    Weights in PyTorch layout: w_ih (4H, I), w_hh (4H, H), b_* (4H,),
    w_out (O, H), b_out (O,). Gate order i, f, g, o.
    """
    B, T, I = x.shape
    H = w_hh.shape[1]
    O = w_out.shape[0]
    Hp = _round_up(H, LANE)
    f32 = jnp.float32
    bf16 = jnp.bfloat16

    # sigmoid(z) = 0.5*(tanh(z/2)+1): bake the z/2 pre-scale of the i, f, o gate
    # pre-activations into the one-time weight/bias prep (g stays unscaled).
    gate_pre = jnp.array([0.5, 0.5, 1.0, 0.5], f32).reshape(4, 1, 1)

    # Zero-pad each gate block of the LSTM weights from H -> Hp.
    w_ih_p = (jnp.pad(w_ih.reshape(4, H, I).astype(f32),
                      ((0, 0), (0, Hp - H), (0, 0))) * gate_pre).reshape(4 * Hp, I)
    w_hh_p = (jnp.pad(w_hh.reshape(4, H, H).astype(f32),
                      ((0, 0), (0, Hp - H), (0, Hp - H))) * gate_pre).reshape(4 * Hp, Hp)
    b_p = (jnp.pad((b_ih + b_hh).reshape(4, H).astype(f32),
                   ((0, 0), (0, Hp - H))) * gate_pre[:, :, 0]).reshape(1, 4 * Hp)

    # Hoisted input projection: one bf16 GEMM over all timesteps (f32 accumulation
    # + f32 bias add), emitted directly time-major (no standalone transpose of x).
    xg = jnp.einsum('bti,gi->tbg', x.astype(bf16), w_ih_p.astype(bf16),
                    preferred_element_type=f32) + b_p               # (T, B, 4Hp) f32

    # Block the time axis; trailing pad only writes rows that get trimmed.
    t_blk = max(1, min(t_block, T))
    Tp = _round_up(T, t_blk)
    if Tp != T:
        xg = jnp.pad(xg, ((0, Tp - T), (0, 0), (0, 0)))

    whh_T = w_hh_p.T.astype(bf16)        # (Hp, 4Hp) resident recurrent weight

    h_hist = pl.pallas_call(
        _lstm_recurrence_kernel,
        out_shape=jax.ShapeDtypeStruct((Tp, B, Hp), f32),
        grid_spec=pltpu.PrefetchScalarGridSpec(
            num_scalar_prefetch=0,
            grid=(Tp // t_blk,),
            in_specs=[
                pl.BlockSpec((t_blk, B, 4 * Hp), lambda i: (i, 0, 0)),  # precomp gates
                pl.BlockSpec((Hp, 4 * Hp), lambda i: (0, 0)),           # W_hh^T (bf16)
            ],
            out_specs=pl.BlockSpec((t_blk, B, Hp), lambda i: (i, 0, 0)),
            scratch_shapes=[
                pltpu.VMEM((B, Hp), bf16),   # h carry across grid steps
                pltpu.VMEM((B, Hp), f32),    # c carry across grid steps
            ],
        ),
        compiler_params=pltpu.CompilerParams(
            dimension_semantics=("arbitrary",),   # recurrence: sequential axis
        ),
    )(xg, whh_T)

    # Hoisted Linear head: one (T*B, H) x (H, O) GEMM in the wrapper; the
    # 'tbh,oh->bto' einsum folds the time/batch transpose into the GEMM output,
    # so the result is emitted directly batch-first.
    out = jnp.einsum('tbh,oh->bto', h_hist[:T, :, :H], w_out.astype(f32),
                     preferred_element_type=f32) + b_out.astype(f32)
    return out


def _reference_forward(x_btI, w_ih, w_hh, b_ih, b_hh, w_out, b_out):
    """Pure-JAX f32 reference mirroring torch.nn.LSTM(batch_first=True) + Linear."""
    B, T, I = x_btI.shape
    H = w_hh.shape[1]

    def step(carry, x_t):
        h, c = carry
        gates = x_t @ w_ih.T + h @ w_hh.T + b_ih + b_hh
        i_g = jax.nn.sigmoid(gates[:, 0 * H:1 * H])
        f_g = jax.nn.sigmoid(gates[:, 1 * H:2 * H])
        g_g = jnp.tanh(gates[:, 2 * H:3 * H])
        o_g = jax.nn.sigmoid(gates[:, 3 * H:4 * H])
        c_new = f_g * c + i_g * g_g
        h_new = o_g * jnp.tanh(c_new)
        return (h_new, c_new), h_new

    h0 = jnp.zeros((B, H), jnp.float32)
    c0 = jnp.zeros((B, H), jnp.float32)
    _, hs = jax.lax.scan(step, (h0, c0), jnp.transpose(x_btI, (1, 0, 2)))
    out = jnp.einsum("tbh,oh->tbo", hs, w_out) + b_out
    return jnp.transpose(out, (1, 0, 2))


if __name__ == "__main__":
    # Small shapes consistent with RNNModel(input_size, hidden_size, output_size)
    B, T = 2, 8
    input_size, hidden_size, output_size = 16, 32, 8

    key = jax.random.PRNGKey(0)
    keys = jax.random.split(key, 8)
    k = 1.0 / np.sqrt(hidden_size)

    # PyTorch-style uniform(-1/sqrt(H), 1/sqrt(H)) init
    w_ih = jax.random.uniform(keys[0], (4 * hidden_size, input_size), jnp.float32, -k, k)
    w_hh = jax.random.uniform(keys[1], (4 * hidden_size, hidden_size), jnp.float32, -k, k)
    b_ih = jax.random.uniform(keys[2], (4 * hidden_size,), jnp.float32, -k, k)
    b_hh = jax.random.uniform(keys[3], (4 * hidden_size,), jnp.float32, -k, k)
    w_out = jax.random.uniform(keys[4], (output_size, hidden_size), jnp.float32, -k, k)
    b_out = jax.random.uniform(keys[5], (output_size,), jnp.float32, -k, k)

    x = jax.random.normal(keys[6], (B, T, input_size), jnp.float32)

    ref = jax.block_until_ready(
        _reference_forward(x, w_ih, w_hh, b_ih, b_hh, w_out, b_out))

    # Default t_block (clamped to T=8): single grid step, whole recurrence in-block.
    out = jax.block_until_ready(
        rnn_model_forward(x, w_ih, w_hh, b_ih, b_hh, w_out, b_out))
    assert out.shape == (B, T, output_size), out.shape
    # Tolerance loosened vs pure-f32 because x/W_ih/W_hh/h run in bf16 on the MXU
    # (f32 accumulation); a structural bug would be O(1) off.
    np.testing.assert_allclose(np.asarray(out), np.asarray(ref), rtol=2e-2, atol=3e-2)

    # t_block=4 -> grid=(2,): exercises the cross-grid-step h/c carry path too.
    out2 = jax.block_until_ready(
        rnn_model_forward(x, w_ih, w_hh, b_ih, b_hh, w_out, b_out, t_block=4))
    np.testing.assert_allclose(np.asarray(out2), np.asarray(ref), rtol=2e-2, atol=3e-2)

    print("KERNEL_OK")
</pallas_src>

<mosaic_0001>
module attributes {stable_mosaic.version = 11 : i64} {
  func.func @_lstm_recurrence_kernel(%arg0: i32, %arg1: memref<8x2x512xf32, #tpu.memory_space<vmem>>, %arg2: memref<128x512xbf16, #tpu.memory_space<vmem>>, %arg3: memref<8x2x128xf32, #tpu.memory_space<vmem>>, %arg4: memref<2x128xbf16, #tpu.memory_space<vmem>>, %arg5: memref<2x128xf32, #tpu.memory_space<vmem>>) attributes {dimension_semantics = [#tpu.dimension_semantics<arbitrary>], iteration_bounds = array<i64: 1>, scalar_prefetch = 0 : i64, scratch_operands = 2 : i64, tpu.core_type = #tpu.core_type<tc>, window_params = [{transform_indices = @transform_0, window_bounds = array<i64: 8, 2, 512>}, {pipeline_mode = #tpu.pipeline_mode<synchronous>, transform_indices = @transform_1, window_bounds = array<i64: 128, 512>}, {transform_indices = @transform_2, window_bounds = array<i64: 8, 2, 128>}]} {
    %c0_i32 = arith.constant 0 : i32
    %0 = arith.cmpi eq, %arg0, %c0_i32 : i32
    %1 = arith.extui %0 : i1 to i32
    %c0_i32_0 = arith.constant 0 : i32
    %2 = arith.cmpi ne, %1, %c0_i32_0 : i32
    scf.if %2 {
      %cst_112 = arith.constant 0.000000e+00 : bf16
      %271 = vector.broadcast %cst_112 : bf16 to vector<2x128xbf16>
      %c0_113 = arith.constant 0 : index
      %c0_114 = arith.constant 0 : index
      %272 = vector.load %arg4[%c0_113, %c0_114] : memref<2x128xbf16, #tpu.memory_space<vmem>>, vector<2x128xbf16>
      tpu.vector_store %arg4[%c0_113, %c0_114], %271 {strides = array<i32>} : memref<2x128xbf16, #tpu.memory_space<vmem>>, vector<2x128xbf16>,
      %cst_115 = arith.constant 0.000000e+00 : f32
      %273 = vector.broadcast %cst_115 : f32 to vector<2x128xf32>
      %c0_116 = arith.constant 0 : index
      %c0_117 = arith.constant 0 : index
      %274 = vector.load %arg5[%c0_116, %c0_117] : memref<2x128xf32, #tpu.memory_space<vmem>>, vector<2x128xf32>
      tpu.vector_store %arg5[%c0_116, %c0_117], %273 {strides = array<i32>} : memref<2x128xf32, #tpu.memory_space<vmem>>, vector<2x128xf32>,
    } else {
    }
    %c0 = arith.constant 0 : index
    %c0_1 = arith.constant 0 : index
    %3 = vector.load %arg4[%c0, %c0_1] : memref<2x128xbf16, #tpu.memory_space<vmem>>, vector<2x128xbf16>
    %c0_2 = arith.constant 0 : index
    %c0_3 = arith.constant 0 : index
    %4 = vector.load %arg5[%c0_2, %c0_3] : memref<2x128xf32, #tpu.memory_space<vmem>>, vector<2x128xf32>
    %c0_i32_4 = arith.constant 0 : i32
    %5 = arith.index_cast %c0_i32_4 : i32 to index
    %c0_5 = arith.constant 0 : index
    %c0_6 = arith.constant 0 : index
    %6 = vector.load %arg1[%5, %c0_5, %c0_6] : memref<8x2x512xf32, #tpu.memory_space<vmem>>, vector<1x2x512xf32>
    %7 = vector.shape_cast %6 : vector<1x2x512xf32> to vector<2x512xf32>
    %c0_7 = arith.constant 0 : index
    %c0_8 = arith.constant 0 : index
    %8 = vector.load %arg2[%c0_7, %c0_8] : memref<128x512xbf16, #tpu.memory_space<vmem>>, vector<128x512xbf16>
    %cst = arith.constant dense<0.000000e+00> : vector<2x512xf32>
    %9 = tpu.matmul %3, %8, %cst {dimension_numbers = #tpu.dot_dimension_numbers<[1], [0], [0], [1], [0, 0, 1, 1], [], []>} : vector<2x128xbf16>, vector<128x512xbf16>, vector<2x512xf32> -> vector<2x512xf32>
    %10 = arith.addf %7, %9 : vector<2x512xf32>
    %11 = math.tanh %10 : vector<2x512xf32>
    %12 = vector.extract_strided_slice %11 {offsets = [0, 0], sizes = [2, 128], strides = [1, 1]} : vector<2x512xf32> to vector<2x128xf32>
    %cst_9 = arith.constant 1.000000e+00 : f32
    %13 = vector.broadcast %cst_9 : f32 to vector<2x128xf32>
    %14 = arith.addf %12, %13 : vector<2x128xf32>
    %cst_10 = arith.constant 5.000000e-01 : f32
    %15 = vector.broadcast %cst_10 : f32 to vector<2x128xf32>
    %16 = arith.mulf %15, %14 : vector<2x128xf32>
    %17 = vector.extract_strided_slice %11 {offsets = [0, 128], sizes = [2, 128], strides = [1, 1]} : vector<2x512xf32> to vector<2x128xf32>
    %cst_11 = arith.constant 1.000000e+00 : f32
    %18 = vector.broadcast %cst_11 : f32 to vector<2x128xf32>
    %19 = arith.addf %17, %18 : vector<2x128xf32>
    %cst_12 = arith.constant 5.000000e-01 : f32
    %20 = vector.broadcast %cst_12 : f32 to vector<2x128xf32>
    %21 = arith.mulf %20, %19 : vector<2x128xf32>
    %22 = vector.extract_strided_slice %11 {offsets = [0, 256], sizes = [2, 128], strides = [1, 1]} : vector<2x512xf32> to vector<2x128xf32>
    %23 = vector.extract_strided_slice %11 {offsets = [0, 384], sizes = [2, 128], strides = [1, 1]} : vector<2x512xf32> to vector<2x128xf32>
    %cst_13 = arith.constant 1.000000e+00 : f32
    %24 = vector.broadcast %cst_13 : f32 to vector<2x128xf32>
    %25 = arith.addf %23, %24 : vector<2x128xf32>
    %cst_14 = arith.constant 5.000000e-01 : f32
    %26 = vector.broadcast %cst_14 : f32 to vector<2x128xf32>
    %27 = arith.mulf %26, %25 : vector<2x128xf32>
    %28 = arith.mulf %21, %4 : vector<2x128xf32>
    %29 = arith.mulf %16, %22 : vector<2x128xf32>
    %30 = arith.addf %28, %29 : vector<2x128xf32>
    %31 = math.tanh %30 : vector<2x128xf32>
    %32 = arith.mulf %27, %31 : vector<2x128xf32>
    %33 = arith.index_cast %c0_i32_4 : i32 to index
    %c0_15 = arith.constant 0 : index
    %c0_16 = arith.constant 0 : index
    %34 = vector.load %arg3[%33, %c0_15, %c0_16] : memref<8x2x128xf32, #tpu.memory_space<vmem>>, vector<1x2x128xf32>
    %35 = vector.shape_cast %34 : vector<1x2x128xf32> to vector<2x128xf32>
    %36 = vector.shape_cast %32 : vector<2x128xf32> to vector<1x2x128xf32>
    tpu.vector_store %arg3[%33, %c0_15, %c0_16], %36 {strides = array<i32>} : memref<8x2x128xf32, #tpu.memory_space<vmem>>, vector<1x2x128xf32>,
    %37 = arith.truncf %32 : vector<2x128xf32> to vector<2x128xbf16>
    %c1_i32 = arith.constant 1 : i32
    %38 = arith.index_cast %c1_i32 : i32 to index
    %c0_17 = arith.constant 0 : index
    %c0_18 = arith.constant 0 : index
    %39 = vector.load %arg1[%38, %c0_17, %c0_18] : memref<8x2x512xf32, #tpu.memory_space<vmem>>, vector<1x2x512xf32>
    %40 = vector.shape_cast %39 : vector<1x2x512xf32> to vector<2x512xf32>
    %c0_19 = arith.constant 0 : index
    %c0_20 = arith.constant 0 : index
    %41 = vector.load %arg2[%c0_19, %c0_20] : memref<128x512xbf16, #tpu.memory_space<vmem>>, vector<128x512xbf16>
    %cst_21 = arith.constant dense<0.000000e+00> : vector<2x512xf32>
    %42 = tpu.matmul %37, %41, %cst_21 {dimension_numbers = #tpu.dot_dimension_numbers<[1], [0], [0], [1], [0, 0, 1, 1], [], []>} : vector<2x128xbf16>, vector<128x512xbf16>, vector<2x512xf32> -> vector<2x512xf32>
    %43 = arith.addf %40, %42 : vector<2x512xf32>
    %44 = math.tanh %43 : vector<2x512xf32>
    %45 = vector.extract_strided_slice %44 {offsets = [0, 0], sizes = [2, 128], strides = [1, 1]} : vector<2x512xf32> to vector<2x128xf32>
    %cst_22 = arith.constant 1.000000e+00 : f32
    %46 = vector.broadcast %cst_22 : f32 to vector<2x128xf32>
    %47 = arith.addf %45, %46 : vector<2x128xf32>
    %cst_23 = arith.constant 5.000000e-01 : f32
    %48 = vector.broadcast %cst_23 : f32 to vector<2x128xf32>
    %49 = arith.mulf %48, %47 : vector<2x128xf32>
    %50 = vector.extract_strided_slice %44 {offsets = [0, 128], sizes = [2, 128], strides = [1, 1]} : vector<2x512xf32> to vector<2x128xf32>
    %cst_24 = arith.constant 1.000000e+00 : f32
    %51 = vector.broadcast %cst_24 : f32 to vector<2x128xf32>
    %52 = arith.addf %50, %51 : vector<2x128xf32>
    %cst_25 = arith.constant 5.000000e-01 : f32
    %53 = vector.broadcast %cst_25 : f32 to vector<2x128xf32>
    %54 = arith.mulf %53, %52 : vector<2x128xf32>
    %55 = vector.extract_strided_slice %44 {offsets = [0, 256], sizes = [2, 128], strides = [1, 1]} : vector<2x512xf32> to vector<2x128xf32>
    %56 = vector.extract_strided_slice %44 {offsets = [0, 384], sizes = [2, 128], strides = [1, 1]} : vector<2x512xf32> to vector<2x128xf32>
    %cst_26 = arith.constant 1.000000e+00 : f32
    %57 = vector.broadcast %cst_26 : f32 to vector<2x128xf32>
    %58 = arith.addf %56, %57 : vector<2x128xf32>
    %cst_27 = arith.constant 5.000000e-01 : f32
    %59 = vector.broadcast %cst_27 : f32 to vector<2x128xf32>
    %60 = arith.mulf %59, %58 : vector<2x128xf32>
    %61 = arith.mulf %54, %30 : vector<2x128xf32>
    %62 = arith.mulf %49, %55 : vector<2x128xf32>
    %63 = arith.addf %61, %62 : vector<2x128xf32>
    %64 = math.tanh %63 : vector<2x128xf32>
    %65 = arith.mulf %60, %64 : vector<2x128xf32>
    %66 = arith.index_cast %c1_i32 : i32 to index
    %c0_28 = arith.constant 0 : index
    %c0_29 = arith.constant 0 : index
    %67 = vector.load %arg3[%66, %c0_28, %c0_29] : memref<8x2x128xf32, #tpu.memory_space<vmem>>, vector<1x2x128xf32>
    %68 = vector.shape_cast %67 : vector<1x2x128xf32> to vector<2x128xf32>
    %69 = vector.shape_cast %65 : vector<2x128xf32> to vector<1x2x128xf32>
    tpu.vector_store %arg3[%66, %c0_28, %c0_29], %69 {strides = array<i32>} : memref<8x2x128xf32, #tpu.memory_space<vmem>>, vector<1x2x128xf32>,
    %70 = arith.truncf %65 : vector<2x128xf32> to vector<2x128xbf16>
    %c2_i32 = arith.constant 2 : i32
    %71 = arith.index_cast %c2_i32 : i32 to index
    %c0_30 = arith.constant 0 : index
    %c0_31 = arith.constant 0 : index
    %72 = vector.load %arg1[%71, %c0_30, %c0_31] : memref<8x2x512xf32, #tpu.memory_space<vmem>>, vector<1x2x512xf32>
    %73 = vector.shape_cast %72 : vector<1x2x512xf32> to vector<2x512xf32>
    %c0_32 = arith.constant 0 : index
    %c0_33 = arith.constant 0 : index
    %74 = vector.load %arg2[%c0_32, %c0_33] : memref<128x512xbf16, #tpu.memory_space<vmem>>, vector<128x512xbf16>
    %cst_34 = arith.constant dense<0.000000e+00> : vector<2x512xf32>
    %75 = tpu.matmul %70, %74, %cst_34 {dimension_numbers = #tpu.dot_dimension_numbers<[1], [0], [0], [1], [0, 0, 1, 1], [], []>} : vector<2x128xbf16>, vector<128x512xbf16>, vector<2x512xf32> -> vector<2x512xf32>
    %76 = arith.addf %73, %75 : vector<2x512xf32>
    %77 = math.tanh %76 : vector<2x512xf32>
    %78 = vector.extract_strided_slice %77 {offsets = [0, 0], sizes = [2, 128], strides = [1, 1]} : vector<2x512xf32> to vector<2x128xf32>
    %cst_35 = arith.constant 1.000000e+00 : f32
    %79 = vector.broadcast %cst_35 : f32 to vector<2x128xf32>
    %80 = arith.addf %78, %79 : vector<2x128xf32>
    %cst_36 = arith.constant 5.000000e-01 : f32
    %81 = vector.broadcast %cst_36 : f32 to vector<2x128xf32>
    %82 = arith.mulf %81, %80 : vector<2x128xf32>
    %83 = vector.extract_strided_slice %77 {offsets = [0, 128], sizes = [2, 128], strides = [1, 1]} : vector<2x512xf32> to vector<2x128xf32>
    %cst_37 = arith.constant 1.000000e+00 : f32
    %84 = vector.broadcast %cst_37 : f32 to vector<2x128xf32>
    %85 = arith.addf %83, %84 : vector<2x128xf32>
    %cst_38 = arith.constant 5.000000e-01 : f32
    %86 = vector.broadcast %cst_38 : f32 to vector<2x128xf32>
    %87 = arith.mulf %86, %85 : vector<2x128xf32>
    %88 = vector.extract_strided_slice %77 {offsets = [0, 256], sizes = [2, 128], strides = [1, 1]} : vector<2x512xf32> to vector<2x128xf32>
    %89 = vector.extract_strided_slice %77 {offsets = [0, 384], sizes = [2, 128], strides = [1, 1]} : vector<2x512xf32> to vector<2x128xf32>
    %cst_39 = arith.constant 1.000000e+00 : f32
    %90 = vector.broadcast %cst_39 : f32 to vector<2x128xf32>
    %91 = arith.addf %89, %90 : vector<2x128xf32>
    %cst_40 = arith.constant 5.000000e-01 : f32
    %92 = vector.broadcast %cst_40 : f32 to vector<2x128xf32>
    %93 = arith.mulf %92, %91 : vector<2x128xf32>
    %94 = arith.mulf %87, %63 : vector<2x128xf32>
    %95 = arith.mulf %82, %88 : vector<2x128xf32>
    %96 = arith.addf %94, %95 : vector<2x128xf32>
    %97 = math.tanh %96 : vector<2x128xf32>
    %98 = arith.mulf %93, %97 : vector<2x128xf32>
    %99 = arith.index_cast %c2_i32 : i32 to index
    %c0_41 = arith.constant 0 : index
    %c0_42 = arith.constant 0 : index
    %100 = vector.load %arg3[%99, %c0_41, %c0_42] : memref<8x2x128xf32, #tpu.memory_space<vmem>>, vector<1x2x128xf32>
    %101 = vector.shape_cast %100 : vector<1x2x128xf32> to vector<2x128xf32>
    %102 = vector.shape_cast %98 : vector<2x128xf32> to vector<1x2x128xf32>
    tpu.vector_store %arg3[%99, %c0_41, %c0_42], %102 {strides = array<i32>} : memref<8x2x128xf32, #tpu.memory_space<vmem>>, vector<1x2x128xf32>,
    %103 = arith.truncf %98 : vector<2x128xf32> to vector<2x128xbf16>
    %c3_i32 = arith.constant 3 : i32
    %104 = arith.index_cast %c3_i32 : i32 to index
    %c0_43 = arith.constant 0 : index
    %c0_44 = arith.constant 0 : index
    %105 = vector.load %arg1[%104, %c0_43, %c0_44] : memref<8x2x512xf32, #tpu.memory_space<vmem>>, vector<1x2x512xf32>
    %106 = vector.shape_cast %105 : vector<1x2x512xf32> to vector<2x512xf32>
    %c0_45 = arith.constant 0 : index
    %c0_46 = arith.constant 0 : index
    %107 = vector.load %arg2[%c0_45, %c0_46] : memref<128x512xbf16, #tpu.memory_space<vmem>>, vector<128x512xbf16>
    %cst_47 = arith.constant dense<0.000000e+00> : vector<2x512xf32>
    %108 = tpu.matmul %103, %107, %cst_47 {dimension_numbers = #tpu.dot_dimension_numbers<[1], [0], [0], [1], [0, 0, 1, 1], [], []>} : vector<2x128xbf16>, vector<128x512xbf16>, vector<2x512xf32> -> vector<2x512xf32>
    %109 = arith.addf %106, %108 : vector<2x512xf32>
    %110 = math.tanh %109 : vector<2x512xf32>
    %111 = vector.extract_strided_slice %110 {offsets = [0, 0], sizes = [2, 128], strides = [1, 1]} : vector<2x512xf32> to vector<2x128xf32>
    %cst_48 = arith.constant 1.000000e+00 : f32
    %112 = vector.broadcast %cst_48 : f32 to vector<2x128xf32>
    %113 = arith.addf %111, %112 : vector<2x128xf32>
    %cst_49 = arith.constant 5.000000e-01 : f32
    %114 = vector.broadcast %cst_49 : f32 to vector<2x128xf32>
    %115 = arith.mulf %114, %113 : vector<2x128xf32>
    %116 = vector.extract_strided_slice %110 {offsets = [0, 128], sizes = [2, 128], strides = [1, 1]} : vector<2x512xf32> to vector<2x128xf32>
    %cst_50 = arith.constant 1.000000e+00 : f32
    %117 = vector.broadcast %cst_50 : f32 to vector<2x128xf32>
    %118 = arith.addf %116, %117 : vector<2x128xf32>
    %cst_51 = arith.constant 5.000000e-01 : f32
    %119 = vector.broadcast %cst_51 : f32 to vector<2x128xf32>
    %120 = arith.mulf %119, %118 : vector<2x128xf32>
    %121 = vector.extract_strided_slice %110 {offsets = [0, 256], sizes = [2, 128], strides = [1, 1]} : vector<2x512xf32> to vector<2x128xf32>
    %122 = vector.extract_strided_slice %110 {offsets = [0, 384], sizes = [2, 128], strides = [1, 1]} : vector<2x512xf32> to vector<2x128xf32>
    %cst_52 = arith.constant 1.000000e+00 : f32
    %123 = vector.broadcast %cst_52 : f32 to vector<2x128xf32>
    %124 = arith.addf %122, %123 : vector<2x128xf32>
    %cst_53 = arith.constant 5.000000e-01 : f32
    %125 = vector.broadcast %cst_53 : f32 to vector<2x128xf32>
    %126 = arith.mulf %125, %124 : vector<2x128xf32>
    %127 = arith.mulf %120, %96 : vector<2x128xf32>
    %128 = arith.mulf %115, %121 : vector<2x128xf32>
    %129 = arith.addf %127, %128 : vector<2x128xf32>
    %130 = math.tanh %129 : vector<2x128xf32>
    %131 = arith.mulf %126, %130 : vector<2x128xf32>
    %132 = arith.index_cast %c3_i32 : i32 to index
    %c0_54 = arith.constant 0 : index
    %c0_55 = arith.constant 0 : index
    %133 = vector.load %arg3[%132, %c0_54, %c0_55] : memref<8x2x128xf32, #tpu.memory_space<vmem>>, vector<1x2x128xf32>
    %134 = vector.shape_cast %133 : vector<1x2x128xf32> to vector<2x128xf32>
    %135 = vector.shape_cast %131 : vector<2x128xf32> to vector<1x2x128xf32>
    tpu.vector_store %arg3[%132, %c0_54, %c0_55], %135 {strides = array<i32>} : memref<8x2x128xf32, #tpu.memory_space<vmem>>, vector<1x2x128xf32>,
    %136 = arith.truncf %131 : vector<2x128xf32> to vector<2x128xbf16>
    %c4_i32 = arith.constant 4 : i32
    %137 = arith.index_cast %c4_i32 : i32 to index
    %c0_56 = arith.constant 0 : index
    %c0_57 = arith.constant 0 : index
    %138 = vector.load %arg1[%137, %c0_56, %c0_57] : memref<8x2x512xf32, #tpu.memory_space<vmem>>, vector<1x2x512xf32>
    %139 = vector.shape_cast %138 : vector<1x2x512xf32> to vector<2x512xf32>
    %c0_58 = arith.constant 0 : index
    %c0_59 = arith.constant 0 : index
    %140 = vector.load %arg2[%c0_58, %c0_59] : memref<128x512xbf16, #tpu.memory_space<vmem>>, vector<128x512xbf16>
    %cst_60 = arith.constant dense<0.000000e+00> : vector<2x512xf32>
    %141 = tpu.matmul %136, %140, %cst_60 {dimension_numbers = #tpu.dot_dimension_numbers<[1], [0], [0], [1], [0, 0, 1, 1], [], []>} : vector<2x128xbf16>, vector<128x512xbf16>, vector<2x512xf32> -> vector<2x512xf32>
    %142 = arith.addf %139, %141 : vector<2x512xf32>
    %143 = math.tanh %142 : vector<2x512xf32>
    %144 = vector.extract_strided_slice %143 {offsets = [0, 0], sizes = [2, 128], strides = [1, 1]} : vector<2x512xf32> to vector<2x128xf32>
    %cst_61 = arith.constant 1.000000e+00 : f32
    %145 = vector.broadcast %cst_61 : f32 to vector<2x128xf32>
    %146 = arith.addf %144, %145 : vector<2x128xf32>
    %cst_62 = arith.constant 5.000000e-01 : f32
    %147 = vector.broadcast %cst_62 : f32 to vector<2x128xf32>
    %148 = arith.mulf %147, %146 : vector<2x128xf32>
    %149 = vector.extract_strided_slice %143 {offsets = [0, 128], sizes = [2, 128], strides = [1, 1]} : vector<2x512xf32> to vector<2x128xf32>
    %cst_63 = arith.constant 1.000000e+00 : f32
    %150 = vector.broadcast %cst_63 : f32 to vector<2x128xf32>
    %151 = arith.addf %149, %150 : vector<2x128xf32>
    %cst_64 = arith.constant 5.000000e-01 : f32
    %152 = vector.broadcast %cst_64 : f32 to vector<2x128xf32>
    %153 = arith.mulf %152, %151 : vector<2x128xf32>
    %154 = vector.extract_strided_slice %143 {offsets = [0, 256], sizes = [2, 128], strides = [1, 1]} : vector<2x512xf32> to vector<2x128xf32>
    %155 = vector.extract_strided_slice %143 {offsets = [0, 384], sizes = [2, 128], strides = [1, 1]} : vector<2x512xf32> to vector<2x128xf32>
    %cst_65 = arith.constant 1.000000e+00 : f32
    %156 = vector.broadcast %cst_65 : f32 to vector<2x128xf32>
    %157 = arith.addf %155, %156 : vector<2x128xf32>
    %cst_66 = arith.constant 5.000000e-01 : f32
    %158 = vector.broadcast %cst_66 : f32 to vector<2x128xf32>
    %159 = arith.mulf %158, %157 : vector<2x128xf32>
    %160 = arith.mulf %153, %129 : vector<2x128xf32>
    %161 = arith.mulf %148, %154 : vector<2x128xf32>
    %162 = arith.addf %160, %161 : vector<2x128xf32>
    %163 = math.tanh %162 : vector<2x128xf32>
    %164 = arith.mulf %159, %163 : vector<2x128xf32>
    %165 = arith.index_cast %c4_i32 : i32 to index
    %c0_67 = arith.constant 0 : index
    %c0_68 = arith.constant 0 : index
    %166 = vector.load %arg3[%165, %c0_67, %c0_68] : memref<8x2x128xf32, #tpu.memory_space<vmem>>, vector<1x2x128xf32>
    %167 = vector.shape_cast %166 : vector<1x2x128xf32> to vector<2x128xf32>
    %168 = vector.shape_cast %164 : vector<2x128xf32> to vector<1x2x128xf32>
    tpu.vector_store %arg3[%165, %c0_67, %c0_68], %168 {strides = array<i32>} : memref<8x2x128xf32, #tpu.memory_space<vmem>>, vector<1x2x128xf32>,
    %169 = arith.truncf %164 : vector<2x128xf32> to vector<2x128xbf16>
    %c5_i32 = arith.constant 5 : i32
    %170 = arith.index_cast %c5_i32 : i32 to index
    %c0_69 = arith.constant 0 : index
    %c0_70 = arith.constant 0 : index
    %171 = vector.load %arg1[%170, %c0_69, %c0_70] : memref<8x2x512xf32, #tpu.memory_space<vmem>>, vector<1x2x512xf32>
    %172 = vector.shape_cast %171 : vector<1x2x512xf32> to vector<2x512xf32>
    %c0_71 = arith.constant 0 : index
    %c0_72 = arith.constant 0 : index
    %173 = vector.load %arg2[%c0_71, %c0_72] : memref<128x512xbf16, #tpu.memory_space<vmem>>, vector<128x512xbf16>
    %cst_73 = arith.constant dense<0.000000e+00> : vector<2x512xf32>
    %174 = tpu.matmul %169, %173, %cst_73 {dimension_numbers = #tpu.dot_dimension_numbers<[1], [0], [0], [1], [0, 0, 1, 1], [], []>} : vector<2x128xbf16>, vector<128x512xbf16>, vector<2x512xf32> -> vector<2x512xf32>
    %175 = arith.addf %172, %174 : vector<2x512xf32>
    %176 = math.tanh %175 : vector<2x512xf32>
    %177 = vector.extract_strided_slice %176 {offsets = [0, 0], sizes = [2, 128], strides = [1, 1]} : vector<2x512xf32> to vector<2x128xf32>
    %cst_74 = arith.constant 1.000000e+00 : f32
    %178 = vector.broadcast %cst_74 : f32 to vector<2x128xf32>
    %179 = arith.addf %177, %178 : vector<2x128xf32>
    %cst_75 = arith.constant 5.000000e-01 : f32
    %180 = vector.broadcast %cst_75 : f32 to vector<2x128xf32>
    %181 = arith.mulf %180, %179 : vector<2x128xf32>
    %182 = vector.extract_strided_slice %176 {offsets = [0, 128], sizes = [2, 128], strides = [1, 1]} : vector<2x512xf32> to vector<2x128xf32>
    %cst_76 = arith.constant 1.000000e+00 : f32
    %183 = vector.broadcast %cst_76 : f32 to vector<2x128xf32>
    %184 = arith.addf %182, %183 : vector<2x128xf32>
    %cst_77 = arith.constant 5.000000e-01 : f32
    %185 = vector.broadcast %cst_77 : f32 to vector<2x128xf32>
    %186 = arith.mulf %185, %184 : vector<2x128xf32>
    %187 = vector.extract_strided_slice %176 {offsets = [0, 256], sizes = [2, 128], strides = [1, 1]} : vector<2x512xf32> to vector<2x128xf32>
    %188 = vector.extract_strided_slice %176 {offsets = [0, 384], sizes = [2, 128], strides = [1, 1]} : vector<2x512xf32> to vector<2x128xf32>
    %cst_78 = arith.constant 1.000000e+00 : f32
    %189 = vector.broadcast %cst_78 : f32 to vector<2x128xf32>
    %190 = arith.addf %188, %189 : vector<2x128xf32>
    %cst_79 = arith.constant 5.000000e-01 : f32
    %191 = vector.broadcast %cst_79 : f32 to vector<2x128xf32>
    %192 = arith.mulf %191, %190 : vector<2x128xf32>
    %193 = arith.mulf %186, %162 : vector<2x128xf32>
    %194 = arith.mulf %181, %187 : vector<2x128xf32>
    %195 = arith.addf %193, %194 : vector<2x128xf32>
    %196 = math.tanh %195 : vector<2x128xf32>
    %197 = arith.mulf %192, %196 : vector<2x128xf32>
    %198 = arith.index_cast %c5_i32 : i32 to index
    %c0_80 = arith.constant 0 : index
    %c0_81 = arith.constant 0 : index
    %199 = vector.load %arg3[%198, %c0_80, %c0_81] : memref<8x2x128xf32, #tpu.memory_space<vmem>>, vector<1x2x128xf32>
    %200 = vector.shape_cast %199 : vector<1x2x128xf32> to vector<2x128xf32>
    %201 = vector.shape_cast %197 : vector<2x128xf32> to vector<1x2x128xf32>
    tpu.vector_store %arg3[%198, %c0_80, %c0_81], %201 {strides = array<i32>} : memref<8x2x128xf32, #tpu.memory_space<vmem>>, vector<1x2x128xf32>,
    %202 = arith.truncf %197 : vector<2x128xf32> to vector<2x128xbf16>
    %c6_i32 = arith.constant 6 : i32
    %203 = arith.index_cast %c6_i32 : i32 to index
    %c0_82 = arith.constant 0 : index
    %c0_83 = arith.constant 0 : index
    %204 = vector.load %arg1[%203, %c0_82, %c0_83] : memref<8x2x512xf32, #tpu.memory_space<vmem>>, vector<1x2x512xf32>
    %205 = vector.shape_cast %204 : vector<1x2x512xf32> to vector<2x512xf32>
    %c0_84 = arith.constant 0 : index
    %c0_85 = arith.constant 0 : index
    %206 = vector.load %arg2[%c0_84, %c0_85] : memref<128x512xbf16, #tpu.memory_space<vmem>>, vector<128x512xbf16>
    %cst_86 = arith.constant dense<0.000000e+00> : vector<2x512xf32>
    %207 = tpu.matmul %202, %206, %cst_86 {dimension_numbers = #tpu.dot_dimension_numbers<[1], [0], [0], [1], [0, 0, 1, 1], [], []>} : vector<2x128xbf16>, vector<128x512xbf16>, vector<2x512xf32> -> vector<2x512xf32>
    %208 = arith.addf %205, %207 : vector<2x512xf32>
    %209 = math.tanh %208 : vector<2x512xf32>
    %210 = vector.extract_strided_slice %209 {offsets = [0, 0], sizes = [2, 128], strides = [1, 1]} : vector<2x512xf32> to vector<2x128xf32>
    %cst_87 = arith.constant 1.000000e+00 : f32
    %211 = vector.broadcast %cst_87 : f32 to vector<2x128xf32>
    %212 = arith.addf %210, %211 : vector<2x128xf32>
    %cst_88 = arith.constant 5.000000e-01 : f32
    %213 = vector.broadcast %cst_88 : f32 to vector<2x128xf32>
    %214 = arith.mulf %213, %212 : vector<2x128xf32>
    %215 = vector.extract_strided_slice %209 {offsets = [0, 128], sizes = [2, 128], strides = [1, 1]} : vector<2x512xf32> to vector<2x128xf32>
    %cst_89 = arith.constant 1.000000e+00 : f32
    %216 = vector.broadcast %cst_89 : f32 to vector<2x128xf32>
    %217 = arith.addf %215, %216 : vector<2x128xf32>
    %cst_90 = arith.constant 5.000000e-01 : f32
    %218 = vector.broadcast %cst_90 : f32 to vector<2x128xf32>
    %219 = arith.mulf %218, %217 : vector<2x128xf32>
    %220 = vector.extract_strided_slice %209 {offsets = [0, 256], sizes = [2, 128], strides = [1, 1]} : vector<2x512xf32> to vector<2x128xf32>
    %221 = vector.extract_strided_slice %209 {offsets = [0, 384], sizes = [2, 128], strides = [1, 1]} : vector<2x512xf32> to vector<2x128xf32>
    %cst_91 = arith.constant 1.000000e+00 : f32
    %222 = vector.broadcast %cst_91 : f32 to vector<2x128xf32>
    %223 = arith.addf %221, %222 : vector<2x128xf32>
    %cst_92 = arith.constant 5.000000e-01 : f32
    %224 = vector.broadcast %cst_92 : f32 to vector<2x128xf32>
    %225 = arith.mulf %224, %223 : vector<2x128xf32>
    %226 = arith.mulf %219, %195 : vector<2x128xf32>
    %227 = arith.mulf %214, %220 : vector<2x128xf32>
    %228 = arith.addf %226, %227 : vector<2x128xf32>
    %229 = math.tanh %228 : vector<2x128xf32>
    %230 = arith.mulf %225, %229 : vector<2x128xf32>
    %231 = arith.index_cast %c6_i32 : i32 to index
    %c0_93 = arith.constant 0 : index
    %c0_94 = arith.constant 0 : index
    %232 = vector.load %arg3[%231, %c0_93, %c0_94] : memref<8x2x128xf32, #tpu.memory_space<vmem>>, vector<1x2x128xf32>
    %233 = vector.shape_cast %232 : vector<1x2x128xf32> to vector<2x128xf32>
    %234 = vector.shape_cast %230 : vector<2x128xf32> to vector<1x2x128xf32>
    tpu.vector_store %arg3[%231, %c0_93, %c0_94], %234 {strides = array<i32>} : memref<8x2x128xf32, #tpu.memory_space<vmem>>, vector<1x2x128xf32>,
    %235 = arith.truncf %230 : vector<2x128xf32> to vector<2x128xbf16>
    %c7_i32 = arith.constant 7 : i32
    %236 = arith.index_cast %c7_i32 : i32 to index
    %c0_95 = arith.constant 0 : index
    %c0_96 = arith.constant 0 : index
    %237 = vector.load %arg1[%236, %c0_95, %c0_96] : memref<8x2x512xf32, #tpu.memory_space<vmem>>, vector<1x2x512xf32>
    %238 = vector.shape_cast %237 : vector<1x2x512xf32> to vector<2x512xf32>
    %c0_97 = arith.constant 0 : index
    %c0_98 = arith.constant 0 : index
    %239 = vector.load %arg2[%c0_97, %c0_98] : memref<128x512xbf16, #tpu.memory_space<vmem>>, vector<128x512xbf16>
    %cst_99 = arith.constant dense<0.000000e+00> : vector<2x512xf32>
    %240 = tpu.matmul %235, %239, %cst_99 {dimension_numbers = #tpu.dot_dimension_numbers<[1], [0], [0], [1], [0, 0, 1, 1], [], []>} : vector<2x128xbf16>, vector<128x512xbf16>, vector<2x512xf32> -> vector<2x512xf32>
    %241 = arith.addf %238, %240 : vector<2x512xf32>
    %242 = math.tanh %241 : vector<2x512xf32>
    %243 = vector.extract_strided_slice %242 {offsets = [0, 0], sizes = [2, 128], strides = [1, 1]} : vector<2x512xf32> to vector<2x128xf32>
    %cst_100 = arith.constant 1.000000e+00 : f32
    %244 = vector.broadcast %cst_100 : f32 to vector<2x128xf32>
    %245 = arith.addf %243, %244 : vector<2x128xf32>
    %cst_101 = arith.constant 5.000000e-01 : f32
    %246 = vector.broadcast %cst_101 : f32 to vector<2x128xf32>
    %247 = arith.mulf %246, %245 : vector<2x128xf32>
    %248 = vector.extract_strided_slice %242 {offsets = [0, 128], sizes = [2, 128], strides = [1, 1]} : vector<2x512xf32> to vector<2x128xf32>
    %cst_102 = arith.constant 1.000000e+00 : f32
    %249 = vector.broadcast %cst_102 : f32 to vector<2x128xf32>
    %250 = arith.addf %248, %249 : vector<2x128xf32>
    %cst_103 = arith.constant 5.000000e-01 : f32
    %251 = vector.broadcast %cst_103 : f32 to vector<2x128xf32>
    %252 = arith.mulf %251, %250 : vector<2x128xf32>
    %253 = vector.extract_strided_slice %242 {offsets = [0, 256], sizes = [2, 128], strides = [1, 1]} : vector<2x512xf32> to vector<2x128xf32>
    %254 = vector.extract_strided_slice %242 {offsets = [0, 384], sizes = [2, 128], strides = [1, 1]} : vector<2x512xf32> to vector<2x128xf32>
    %cst_104 = arith.constant 1.000000e+00 : f32
    %255 = vector.broadcast %cst_104 : f32 to vector<2x128xf32>
    %256 = arith.addf %254, %255 : vector<2x128xf32>
    %cst_105 = arith.constant 5.000000e-01 : f32
    %257 = vector.broadcast %cst_105 : f32 to vector<2x128xf32>
    %258 = arith.mulf %257, %256 : vector<2x128xf32>
    %259 = arith.mulf %252, %228 : vector<2x128xf32>
    %260 = arith.mulf %247, %253 : vector<2x128xf32>
    %261 = arith.addf %259, %260 : vector<2x128xf32>
    %262 = math.tanh %261 : vector<2x128xf32>
    %263 = arith.mulf %258, %262 : vector<2x128xf32>
    %264 = arith.index_cast %c7_i32 : i32 to index
    %c0_106 = arith.constant 0 : index
    %c0_107 = arith.constant 0 : index
    %265 = vector.load %arg3[%264, %c0_106, %c0_107] : memref<8x2x128xf32, #tpu.memory_space<vmem>>, vector<1x2x128xf32>
    %266 = vector.shape_cast %265 : vector<1x2x128xf32> to vector<2x128xf32>
    %267 = vector.shape_cast %263 : vector<2x128xf32> to vector<1x2x128xf32>
    tpu.vector_store %arg3[%264, %c0_106, %c0_107], %267 {strides = array<i32>} : memref<8x2x128xf32, #tpu.memory_space<vmem>>, vector<1x2x128xf32>,
    %268 = arith.truncf %263 : vector<2x128xf32> to vector<2x128xbf16>
    %c8_i32 = arith.constant 8 : i32
    %c0_108 = arith.constant 0 : index
    %c0_109 = arith.constant 0 : index
    %269 = vector.load %arg4[%c0_108, %c0_109] : memref<2x128xbf16, #tpu.memory_space<vmem>>, vector<2x128xbf16>
    tpu.vector_store %arg4[%c0_108, %c0_109], %268 {strides = array<i32>} : memref<2x128xbf16, #tpu.memory_space<vmem>>, vector<2x128xbf16>,
    %c0_110 = arith.constant 0 : index
    %c0_111 = arith.constant 0 : index
    %270 = vector.load %arg5[%c0_110, %c0_111] : memref<2x128xf32, #tpu.memory_space<vmem>>, vector<2x128xf32>
    tpu.vector_store %arg5[%c0_110, %c0_111], %261 {strides = array<i32>} : memref<2x128xf32, #tpu.memory_space<vmem>>, vector<2x128xf32>,
    return
  }
  func.func @transform_0(%arg0: i32) -> (i32, i32, i32) {
    %c0_i32 = arith.constant 0 : i32
    %c0_i32_0 = arith.constant 0 : i32
    %c0_i32_1 = arith.constant 0 : i32
    return %arg0, %c0_i32, %c0_i32_0 : i32, i32, i32
  }
  func.func @transform_1(%arg0: i32) -> (i32, i32) {
    %c0_i32 = arith.constant 0 : i32
    %c0_i32_0 = arith.constant 0 : i32
    %c0_i32_1 = arith.constant 0 : i32
    return %c0_i32, %c0_i32_0 : i32, i32
  }
  func.func @transform_2(%arg0: i32) -> (i32, i32, i32) {
    %c0_i32 = arith.constant 0 : i32
    %c0_i32_0 = arith.constant 0 : i32
    %c0_i32_1 = arith.constant 0 : i32
    return %arg0, %c0_i32, %c0_i32_0 : i32, i32, i32
  }
}

</mosaic_0001>

<bundles_post_ra>
// kernel: tpu_custom_call.1
= control target key start
LH: loop header
LB: loop body
LE: loop exit
PB: predicated region body
PF: predicated region fallthrough
CT: control target
= control target key end

     0   :  { %7 = vsyncpa [#allocation5], 0  ;;  %s3609_s0 = inlined_call_operand.hbm [shape: f32[8,2,512], index: 0, kind: input, shape index: {}]   ;;  %s3610_s1 = inlined_call_operand.hbm [shape: bf16[128,512], index: 1, kind: input, shape index: {}]   ;;  %s3611_s2 = inlined_call_operand.hbm [shape: f32[8,2,128], index: 2, kind: output, shape index: {}]  }
   0x1   :  { %8 = vsyncpa [#allocation8], 0 }
   0x2   :  { %9 = vsyncpa [#allocation6], 0  ;;  %s3103_s9 = smov [#allocation4]   ;;  %s3031_s13 = scalar_lea.hbm %s3609_s0, 1024 }
   0x3   :  { %s15_s10 = sshll.u32 %s3103_s9, 4  ;;  %p3032_p0 = scmp.ne.s32.totalorder %s3609_s0, %s3031_s13  ;;  %s16_s10 = int_to_ptr.vmem [resolvable:$true] %s15_s10 }
   0x4   :  { %p3035_p1 = scmp.lt.u32.totalorder %s3031_s13, %s3609_s0 }
   0x6   :  { %p3037_p2 = pnand %p3035_p1, %p3032_p0 }
   0x8   :  { %3040 = shalt.err (!%p3037_p2)
}
   0x9   :  { %s3041_s18 = scalar_lea.vmem %s16_s10, 1024  ;;  %p3046_p4 = scmp.lt.s32.totalorder %s16_s10, %s16_s10 }
   0xa   :  { %p3042_p3 = scmp.ne.s32.totalorder %s16_s10, %s3041_s18  ;;  %p3047_p5 = scmp.lt.s32.totalorder %s3041_s18, %s3041_s18 }
   0xc   :  { %p3048_p6 = por %p3047_p5, %p3046_p4 }
   0xe   :  { %p3049_p7 = pnand %p3048_p6, %p3042_p3 }
  0x10   :  { %3052 = shalt.err (!%p3049_p7)
}
  0x11   :  { %s3104_s19 = smov 128   ;;  %s3105_s20 = smov 8  }
  0x12   :  { %21 = dma.hbm_to_vmem [thread:$0]  %s3609_s0, 1024, %s16_s10, [#allocation5], %s3104_s19, %s3104_s19, %s3105_s20  }
  0x13   :  { %s3106_s23 = smov [#allocation7]   ;;  %s3053_s27 = scalar_lea.hbm %s3610_s1, 4096 }
  0x14   :  { %s27_s24 = sshll.u32 %s3106_s23, 4  ;;  %p3054_p8 = scmp.ne.s32.totalorder %s3610_s1, %s3053_s27  ;;  %s28_s24 = int_to_ptr.vmem [resolvable:$true] %s27_s24 }
  0x15   :  { %p3057_p9 = scmp.lt.u32.totalorder %s3053_s27, %s3610_s1 }
  0x17   :  { %p3059_p10 = pnand %p3057_p9, %p3054_p8 }
  0x19   :  { %3062 = shalt.err (!%p3059_p10)
}
  0x1a   :  { %s3063_s4 = scalar_lea.vmem %s28_s24, 4096  ;;  %p3068_p12 = scmp.lt.s32.totalorder %s28_s24, %s28_s24 }
  0x1b   :  { %p3064_p11 = scmp.ne.s32.totalorder %s28_s24, %s3063_s4  ;;  %p3069_p13 = scmp.lt.s32.totalorder %s3063_s4, %s3063_s4 }
  0x1d   :  { %p3070_p0 = por %p3069_p13, %p3068_p12 }
  0x1f   :  { %p3071_p1 = pnand %p3070_p0, %p3064_p11 }
  0x21   :  { %3074 = shalt.err (!%p3071_p1)
}
  0x22   :  { %s3107_s0 = smov 256   ;;  %s3108_s5 = smov 16  }
  0x23   :  { %33 = dma.hbm_to_vmem [thread:$0]  %s3610_s1, 4096, %s28_s24, [#allocation8], %s3107_s0, %s3107_s0, %s3108_s5  }
  0x24   :  { %3097 = dma.done.wait [#allocation5], 1024  }
  0x25   :  { %3098 = vsyncadd [#allocation5], 4294966272 }
  0x26   :  { %3099 = dma.done.wait [#allocation8], 4096  }
  0x27   :  { %3100 = vsyncadd [#allocation8], 4294963200  ;;  %v3109_v0 = vmov 0   ;;  %v3157_v1 = vld [vmem:[#allocation7 + $0x4] ss:$16 sps:$4 sm:$0xff]   ;;  %v3110_v34 = vmov 0.0   ;;  %v333_v37 = vlaneseq }
  0x28   :  { %274 = vmatprep.mubr.bf16.mxu0 %v3109_v0  ;;  %45 = vst [vmem:[#allocation2] sm:$0x1] %v3109_v0  ;;  %315 = vmatprep.mubr.bf16.mxu1 %v3109_v0  ;;  %v3159_v2 = vld [vmem:[#allocation7 + $0xc] ss:$16 sps:$4 sm:$0xff]   ;;  %v3162_v3 = vld [vmem:[#allocation7] ss:$16 sps:$4 sm:$0xff]  }
  0x29   :  { %242 = vmatprep.subr.bf16.mxu0 %v3157_v1  ;;  %v3164_v4 = vld [vmem:[#allocation7 + $0x8] ss:$16 sps:$4 sm:$0xff]   ;;  %283 = vmatprep.subr.bf16.mxu1 %v3159_v2  ;;  %v3167_v5 = vld [vmem:[#allocation7 + $0x24] ss:$16 sps:$4 sm:$0xff]   ;;  %v3171_v6 = vld [vmem:[#allocation7 + $0x2c] ss:$16 sps:$4 sm:$0xff]  }
  0x2a   :  { %243 = vmatpush1.bf16.msra.mxu0 %v3162_v3  ;;  %284 = vmatpush1.bf16.msra.mxu1 %v3164_v4  ;;  %v3173_v7 = vld [vmem:[#allocation7 + $0x20] ss:$16 sps:$4 sm:$0xff]   ;;  %v3176_v8 = vld [vmem:[#allocation7 + $0x28] ss:$16 sps:$4 sm:$0xff]   ;;  %v3179_v9 = vld [vmem:[#allocation7 + $0x44] ss:$16 sps:$4 sm:$0xff]  }
  0x2b   :  { %244 = vmatprep.subr.bf16.mxu0 %v3167_v5  ;;  %285 = vmatprep.subr.bf16.mxu1 %v3171_v6  ;;  %v3181_v10 = vld [vmem:[#allocation7 + $0x4c] ss:$16 sps:$4 sm:$0xff]   ;;  %v3183_v11 = vld [vmem:[#allocation7 + $0x40] ss:$16 sps:$4 sm:$0xff]   ;;  %v3185_v12 = vld [vmem:[#allocation7 + $0x48] ss:$16 sps:$4 sm:$0xff]  }
  0x2c   :  { %v3189_v13 = vld [vmem:[#allocation7 + $0x64] ss:$16 sps:$4 sm:$0xff]   ;;  %v3193_v14 = vld [vmem:[#allocation7 + $0x6c] ss:$16 sps:$4 sm:$0xff]   ;;  %v3195_v15 = vld [vmem:[#allocation7 + $0x60] ss:$16 sps:$4 sm:$0xff]  }
  0x2d   :  { %v3199_v16 = vld [vmem:[#allocation7 + $0x68] ss:$16 sps:$4 sm:$0xff]   ;;  %v3201_v17 = vld [vmem:[#allocation7 + $0x84] ss:$16 sps:$4 sm:$0xff]   ;;  %v3205_v18 = vld [vmem:[#allocation7 + $0x8c] ss:$16 sps:$4 sm:$0xff]  }
  0x2e   :  { %245 = vmatpush1.bf16.msra.mxu0 %v3173_v7  ;;  %286 = vmatpush1.bf16.msra.mxu1 %v3176_v8  ;;  %v3207_v19 = vld [vmem:[#allocation7 + $0x80] ss:$16 sps:$4 sm:$0xff]   ;;  %v3209_v20 = vld [vmem:[#allocation7 + $0x88] ss:$16 sps:$4 sm:$0xff]   ;;  %v3213_v21 = vld [vmem:[#allocation7 + $0xa4] ss:$16 sps:$4 sm:$0xff]  }
  0x2f   :  { %246 = vmatprep.subr.bf16.mxu0 %v3179_v9  ;;  %287 = vmatprep.subr.bf16.mxu1 %v3181_v10  ;;  %v3217_v22 = vld [vmem:[#allocation7 + $0xac] ss:$16 sps:$4 sm:$0xff]   ;;  %v3221_v23 = vld [vmem:[#allocation7 + $0xa0] ss:$16 sps:$4 sm:$0xff]   ;;  %v3223_v24 = vld [vmem:[#allocation7 + $0xa8] ss:$16 sps:$4 sm:$0xff]  }
  0x30   :  { %v3227_v25 = vld [vmem:[#allocation7 + $0xc4] ss:$16 sps:$4 sm:$0xff]   ;;  %v3229_v26 = vld [vmem:[#allocation7 + $0xcc] ss:$16 sps:$4 sm:$0xff]   ;;  %v3231_v27 = vld [vmem:[#allocation7 + $0xc0] ss:$16 sps:$4 sm:$0xff]  }
  0x31   :  { %v3233_v28 = vld [vmem:[#allocation7 + $0xc8] ss:$16 sps:$4 sm:$0xff]   ;;  %v3235_v29 = vld [vmem:[#allocation7 + $0xe4] ss:$16 sps:$4 sm:$0xff]   ;;  %v3237_v30 = vld [vmem:[#allocation7 + $0xec] ss:$16 sps:$4 sm:$0xff]  }
  0x32   :  { %247 = vmatpush1.bf16.msra.mxu0 %v3183_v11  ;;  %288 = vmatpush1.bf16.msra.mxu1 %v3185_v12  ;;  %v3243_v31 = vld [vmem:[#allocation7 + $0xe0] ss:$16 sps:$4 sm:$0xff]   ;;  %v3245_v32 = vld [vmem:[#allocation7 + $0xe8] ss:$16 sps:$4 sm:$0xff]   ;;  %v47_v33 = vld [vmem:[#allocation2] sm:$0x1] }
  0x33   :  { %248 = vmatprep.subr.bf16.mxu0 %v3189_v13  ;;  %289 = vmatprep.subr.bf16.mxu1 %v3193_v14  ;;  %46 = vst [vmem:[#allocation3] sm:$0x3] %v3110_v34  ;;  %v3111_v35 = vmov 1983009808   ;;  %v334_v39 = vshrl.u32 %v333_v37, 7  ;;  %v49_v53 = vld [vmem:[#allocation4] sm:$0xff] }
  0x34   :  { %v331_v36 = vunpack.c.l.s4 %v3111_v35  ;;  %s3112_s1 = smov [#allocation9]  }
  0x35   :  { %s2622_s8 = sshll.u32 %s3112_s1, 4  ;;  %s2623_s8 = int_to_ptr.vmem [resolvable:$true] %s2622_s8 }
  0x36   :  { %249 = vmatpush1.bf16.msra.mxu0 %v3195_v15  ;;  %290 = vmatpush1.bf16.msra.mxu1 %v3199_v16  ;;  %v332_v38 = vunpack.c.0.s8 %v331_v36  ;;  %s3075_s9 = scalar_lea.vmem %s2623_s8, 256  ;;  %p3080_p3 = scmp.lt.s32.totalorder %s2623_s8, %s2623_s8 }
  0x37   :  { %250 = vmatprep.subr.bf16.mxu0 %v3201_v17  ;;  %291 = vmatprep.subr.bf16.mxu1 %v3205_v18  ;;  %p3076_p2 = scmp.ne.s32.totalorder %s2623_s8, %s3075_s9  ;;  %p3081_p4 = scmp.lt.s32.totalorder %s3075_s9, %s3075_s9 }
  0x38   :  { %v3289_v42 = vsub.s32 %v332_v38, %v334_v39 }
  0x39   :  { %p3082_p5 = por %p3081_p4, %p3080_p3 }
  0x3a   :  { %251 = vmatpush1.bf16.msra.mxu0 %v3207_v19  ;;  %292 = vmatpush1.bf16.msra.mxu1 %v3209_v20  ;;  %v48_v61 = vld [vmem:[#allocation3] sm:$0x3] }
  0x3b   :  { %252 = vmatprep.subr.bf16.mxu0 %v3213_v21  ;;  %293 = vmatprep.subr.bf16.mxu1 %v3217_v22  ;;  %p3083_p6 = pnand %p3082_p5, %p3076_p2 }
  0x3e   :  { %253 = vmatpush1.bf16.msra.mxu0 %v3221_v23  ;;  %294 = vmatpush1.bf16.msra.mxu1 %v3223_v24 }
  0x3f   :  { %254 = vmatprep.subr.bf16.mxu0 %v3227_v25  ;;  %295 = vmatprep.subr.bf16.mxu1 %v3229_v26 }
  0x42   :  { %255 = vmatpush1.bf16.msra.mxu0 %v3231_v27  ;;  %296 = vmatpush1.bf16.msra.mxu1 %v3233_v28 }
  0x43   :  { %256 = vmatprep.subr.bf16.mxu0 %v3235_v29  ;;  %297 = vmatprep.subr.bf16.mxu1 %v3237_v30 }
  0x46   :  { %257 = vmatpush1.bf16.msra.mxu0 %v3243_v31  ;;  %298 = vmatpush1.bf16.msra.mxu1 %v3245_v32 }
  0x47   :  { %562 = vmatprep.subr.bf16.mxu0 %v3157_v1  ;;  %603 = vmatprep.subr.bf16.mxu1 %v3159_v2 }
  0x49   :  { %275 = vmatmul.mubr.bf16.vlgmr.msra.gmra.mrb[0].mxu0 %v47_v33  ;;  %316 = vmatmul.mubr.bf16.vlgmr.msra.gmra.mrb[0].mxu1 %v47_v33 }
  0x4a   :  { %563 = vmatpush1.bf16.msra.mxu0 %v3162_v3  ;;  %604 = vmatpush1.bf16.msra.mxu1 %v3164_v4 }
  0x4b   :  { %564 = vmatprep.subr.bf16.mxu0 %v3167_v5  ;;  %605 = vmatprep.subr.bf16.mxu1 %v3171_v6 }
  0x4c   :  { %594 = vmatprep.mubr.bf16.mxu0 %v3109_v0  ;;  %635 = vmatprep.mubr.bf16.mxu1 %v3109_v0 }
  0x4e   :  { %565 = vmatpush1.bf16.msra.mxu0 %v3173_v7  ;;  %606 = vmatpush1.bf16.msra.mxu1 %v3176_v8 }
  0x4f   :  { %566 = vmatprep.subr.bf16.mxu0 %v3179_v9  ;;  %607 = vmatprep.subr.bf16.mxu1 %v3181_v10 }
  0x52   :  { %567 = vmatpush1.bf16.msra.mxu0 %v3183_v11  ;;  %608 = vmatpush1.bf16.msra.mxu1 %v3185_v12 }
  0x53   :  { %568 = vmatprep.subr.bf16.mxu0 %v3189_v13  ;;  %609 = vmatprep.subr.bf16.mxu1 %v3193_v14 }
  0x56   :  { %569 = vmatpush1.bf16.msra.mxu0 %v3195_v15  ;;  %610 = vmatpush1.bf16.msra.mxu1 %v3199_v16 }
  0x57   :  { %570 = vmatprep.subr.bf16.mxu0 %v3201_v17  ;;  %611 = vmatprep.subr.bf16.mxu1 %v3205_v18 }
  0x5a   :  { %571 = vmatpush1.bf16.msra.mxu0 %v3207_v19  ;;  %612 = vmatpush1.bf16.msra.mxu1 %v3209_v20 }
  0x5b   :  { %572 = vmatprep.subr.bf16.mxu0 %v3213_v21  ;;  %613 = vmatprep.subr.bf16.mxu1 %v3217_v22 }
  0x5e   :  { %573 = vmatpush1.bf16.msra.mxu0 %v3221_v23  ;;  %614 = vmatpush1.bf16.msra.mxu1 %v3223_v24 }
  0x5f   :  { %574 = vmatprep.subr.bf16.mxu0 %v3227_v25  ;;  %615 = vmatprep.subr.bf16.mxu1 %v3229_v26 }
  0x62   :  { %575 = vmatpush1.bf16.msra.mxu0 %v3231_v27  ;;  %616 = vmatpush1.bf16.msra.mxu1 %v3233_v28 }
  0x63   :  { %576 = vmatprep.subr.bf16.mxu0 %v3235_v29  ;;  %617 = vmatprep.subr.bf16.mxu1 %v3237_v30 }
  0x66   :  { %577 = vmatpush1.bf16.msra.mxu0 %v3243_v31  ;;  %618 = vmatpush1.bf16.msra.mxu1 %v3245_v32 }
  0x67   :  { %883 = vmatprep.subr.bf16.mxu0 %v3157_v1  ;;  %924 = vmatprep.subr.bf16.mxu1 %v3159_v2 }
 0x11c   :  { %v276_v40 = vpop.f32.mrb[0].mxu0  ;;  %v317_v41 = vpop.f32.mrb[0].mxu1 }
 0x11d   :  { %v278_v43 = vpop.f32.mrb[1].mxu0  ;;  %v319_v44 = vpop.f32.mrb[1].mxu1 }
 0x11e   :  { %v328_v45 = vcombine.low %v276_v40, %v278_v43  ;;  %v329_v46 = vcombine.low %v317_v41, %v319_v44  ;;  %v280_v47 = vpop.f32.mrb[2].mxu0  ;;  %v321_v48 = vpop.f32.mrb[2].mxu1 }
 0x11f   :  { %v281_v49 = vpop.f32.mrb[3].mxu0  ;;  %v322_v50 = vpop.f32.mrb[3].mxu1 }
 0x120   :  { %v336_v51 = vrot.slane %v328_v45, %v3289_v42  ;;  %v343_v52 = vrot.slane %v329_v46, %v3289_v42 }
 0x122   :  { %v344_v54 = vcombine.low %v336_v51, %v343_v52 }
 0x124   :  { %v346_v55 = vadd.f32 %v344_v54, %v49_v53 }
 0x126   :  { %2999 = vtanh.f32 %v346_v55  ;;  %v369_v55 = vld [vmem:[#allocation4 + $0x8] sm:$0xff] }
 0x130   :  { %v3000_v56 = vpop.eup %2999 }
 0x131   :  { %v348_v57 = vadd.f32 1.0, %v3000_v56  ;;  %v351_v58 = vrot.slane %v3000_v56, 2  ;;  %v360_v63 = vrot.slane %v3000_v56, 4  ;;  %v355_v36 = vrot.slane %v3000_v56, 6 }
 0x133   :  { %v349_v59 = vmul.f32 0.5, %v348_v57  ;;  %v353_v60 = vadd.f32 1.0, %v351_v58  ;;  %v357_v37 = vadd.f32 1.0, %v355_v36 }
 0x135   :  { %v354_v62 = vmul.f32 0.5, %v353_v60  ;;  %v362_v34 = vmul.f32 %v360_v63, %v349_v59  ;;  %v358_v38 = vmul.f32 0.5, %v357_v37 }
 0x137   :  { %v359_v33 = vmul.f32 %v354_v62, %v48_v61 }
 0x139   :  { %v3293_v35 = vadd.f32 %v362_v34, %v359_v33 }
 0x13b   :  { %3001 = vtanh.f32 %v3293_v35 }
 0x145   :  { %v3002_v39 = vpop.eup %3001 }
 0x146   :  { %v365_v40 = vmul.f32 %v3002_v39, %v358_v38 }
 0x148   :  { %366 = vst [vmem:[#allocation9] sm:$0x3] %v365_v40  ;;  %v367_v41 = vpack.c.bf16 %v365_v40, %v365_v40 }
 0x14a   :  { %595 = vmatmul.mubr.bf16.vlgmr.msra.gmra.mrb[4].mxu0 %v367_v41  ;;  %636 = vmatmul.mubr.bf16.vlgmr.msra.gmra.mrb[4].mxu1 %v367_v41 }
 0x14b   :  { %884 = vmatpush1.bf16.msra.mxu0 %v3162_v3  ;;  %925 = vmatpush1.bf16.msra.mxu1 %v3164_v4 }
 0x14c   :  { %885 = vmatprep.subr.bf16.mxu0 %v3167_v5  ;;  %926 = vmatprep.subr.bf16.mxu1 %v3171_v6 }
 0x14d   :  { %915 = vmatprep.mubr.bf16.mxu0 %v3109_v0  ;;  %956 = vmatprep.mubr.bf16.mxu1 %v3109_v0 }
 0x14f   :  { %886 = vmatpush1.bf16.msra.mxu0 %v3173_v7  ;;  %927 = vmatpush1.bf16.msra.mxu1 %v3176_v8 }
 0x150   :  { %887 = vmatprep.subr.bf16.mxu0 %v3179_v9  ;;  %928 = vmatprep.subr.bf16.mxu1 %v3181_v10 }
 0x153   :  { %888 = vmatpush1.bf16.msra.mxu0 %v3183_v11  ;;  %929 = vmatpush1.bf16.msra.mxu1 %v3185_v12 }
 0x154   :  { %889 = vmatprep.subr.bf16.mxu0 %v3189_v13  ;;  %930 = vmatprep.subr.bf16.mxu1 %v3193_v14 }
 0x157   :  { %890 = vmatpush1.bf16.msra.mxu0 %v3195_v15  ;;  %931 = vmatpush1.bf16.msra.mxu1 %v3199_v16 }
 0x158   :  { %891 = vmatprep.subr.bf16.mxu0 %v3201_v17  ;;  %932 = vmatprep.subr.bf16.mxu1 %v3205_v18 }
 0x15b   :  { %892 = vmatpush1.bf16.msra.mxu0 %v3207_v19  ;;  %933 = vmatpush1.bf16.msra.mxu1 %v3209_v20 }
 0x15c   :  { %893 = vmatprep.subr.bf16.mxu0 %v3213_v21  ;;  %934 = vmatprep.subr.bf16.mxu1 %v3217_v22 }
 0x15f   :  { %894 = vmatpush1.bf16.msra.mxu0 %v3221_v23  ;;  %935 = vmatpush1.bf16.msra.mxu1 %v3223_v24 }
 0x160   :  { %895 = vmatprep.subr.bf16.mxu0 %v3227_v25  ;;  %936 = vmatprep.subr.bf16.mxu1 %v3229_v26 }
 0x163   :  { %896 = vmatpush1.bf16.msra.mxu0 %v3231_v27  ;;  %937 = vmatpush1.bf16.msra.mxu1 %v3233_v28 }
 0x164   :  { %897 = vmatprep.subr.bf16.mxu0 %v3235_v29  ;;  %938 = vmatprep.subr.bf16.mxu1 %v3237_v30 }
 0x167   :  { %898 = vmatpush1.bf16.msra.mxu0 %v3243_v31  ;;  %939 = vmatpush1.bf16.msra.mxu1 %v3245_v32 }
 0x168   :  { %1204 = vmatprep.subr.bf16.mxu0 %v3157_v1  ;;  %1245 = vmatprep.subr.bf16.mxu1 %v3159_v2 }
 0x21d   :  { %v596_v43 = vpop.f32.mrb[4].mxu0  ;;  %v637_v44 = vpop.f32.mrb[4].mxu1 }
 0x21e   :  { %v598_v45 = vpop.f32.mrb[5].mxu0  ;;  %v639_v46 = vpop.f32.mrb[5].mxu1 }
 0x21f   :  { %v648_v47 = vcombine.low %v596_v43, %v598_v45  ;;  %v649_v48 = vcombine.low %v637_v44, %v639_v46  ;;  %v600_v49 = vpop.f32.mrb[6].mxu0  ;;  %v641_v50 = vpop.f32.mrb[6].mxu1  ;;  %v3376_v43 = vld [vmem:[#allocation7] ss:$16 sps:$4 sm:$0xff]   ;;  %v3378_v44 = vld [vmem:[#allocation7 + $0x4] ss:$16 sps:$4 sm:$0xff]  }
 0x220   :  { %v601_v51 = vpop.f32.mrb[7].mxu0  ;;  %v642_v52 = vpop.f32.mrb[7].mxu1  ;;  %v3380_v45 = vld [vmem:[#allocation7 + $0x8] ss:$16 sps:$4 sm:$0xff]   ;;  %v3382_v46 = vld [vmem:[#allocation7 + $0xc] ss:$16 sps:$4 sm:$0xff]  }
 0x221   :  { %v656_v53 = vrot.slane %v648_v47, %v3289_v42  ;;  %v663_v54 = vrot.slane %v649_v48, %v3289_v42  ;;  %v3384_v47 = vld [vmem:[#allocation7 + $0x24] ss:$16 sps:$4 sm:$0xff]   ;;  %v3387_v48 = vld [vmem:[#allocation7 + $0x2c] ss:$16 sps:$4 sm:$0xff]   ;;  %v3391_v49 = vld [vmem:[#allocation7 + $0x20] ss:$16 sps:$4 sm:$0xff]  }
 0x222   :  { %v3395_v50 = vld [vmem:[#allocation7 + $0x28] ss:$16 sps:$4 sm:$0xff]   ;;  %v3397_v51 = vld [vmem:[#allocation7 + $0x44] ss:$16 sps:$4 sm:$0xff]   ;;  %v3400_v52 = vld [vmem:[#allocation7 + $0x4c] ss:$16 sps:$4 sm:$0xff]  }
 0x223   :  { %v664_v56 = vcombine.low %v656_v53, %v663_v54  ;;  %v3403_v53 = vld [vmem:[#allocation7 + $0x40] ss:$16 sps:$4 sm:$0xff]   ;;  %v3407_v54 = vld [vmem:[#allocation7 + $0x48] ss:$16 sps:$4 sm:$0xff]  }
 0x225   :  { %v666_v57 = vadd.f32 %v664_v56, %v369_v55  ;;  %v3409_v55 = vld [vmem:[#allocation7 + $0x64] ss:$16 sps:$4 sm:$0xff]   ;;  %v3412_v56 = vld [vmem:[#allocation7 + $0x6c] ss:$16 sps:$4 sm:$0xff]  }
 0x227   :  { %3003 = vtanh.f32 %v666_v57  ;;  %v3415_v57 = vld [vmem:[#allocation7 + $0x60] ss:$16 sps:$4 sm:$0xff]  }
 0x231   :  { %v3004_v1 = vpop.eup %3003 }
 0x232   :  { %v668_v2 = vadd.f32 1.0, %v3004_v1  ;;  %v671_v58 = vrot.slane %v3004_v1, 2  ;;  %v680_v62 = vrot.slane %v3004_v1, 4  ;;  %v675_v36 = vrot.slane %v3004_v1, 6  ;;  %v3419_v1 = vld [vmem:[#allocation7 + $0x68] ss:$16 sps:$4 sm:$0xff]  }
 0x234   :  { %v669_v59 = vmul.f32 0.5, %v668_v2  ;;  %v673_v60 = vadd.f32 1.0, %v671_v58  ;;  %v677_v37 = vadd.f32 1.0, %v675_v36  ;;  %v3421_v2 = vld [vmem:[#allocation7 + $0x84] ss:$16 sps:$4 sm:$0xff]  }
 0x235   :  { %v3424_v58 = vld [vmem:[#allocation7 + $0x8c] ss:$16 sps:$4 sm:$0xff]  }
 0x236   :  { %v674_v61 = vmul.f32 0.5, %v673_v60  ;;  %v682_v33 = vmul.f32 %v680_v62, %v669_v59  ;;  %v678_v38 = vmul.f32 0.5, %v677_v37  ;;  %v3427_v59 = vld [vmem:[#allocation7 + $0x80] ss:$16 sps:$4 sm:$0xff]   ;;  %v3431_v60 = vld [vmem:[#allocation7 + $0x88] ss:$16 sps:$4 sm:$0xff]  }
 0x237   :  { %v3436_v62 = vld [vmem:[#allocation7 + $0xac] ss:$16 sps:$4 sm:$0xff]   ;;  %v3451_v37 = vld [vmem:[#allocation7 + $0xc0] ss:$16 sps:$4 sm:$0xff]  }
 0x238   :  { %v679_v63 = vmul.f32 %v674_v61, %v3293_v35  ;;  %v3433_v61 = vld [vmem:[#allocation7 + $0xa4] ss:$16 sps:$4 sm:$0xff]   ;;  %v3448_v36 = vld [vmem:[#allocation7 + $0xcc] ss:$16 sps:$4 sm:$0xff]  }
 0x23a   :  { %v3333_v34 = vadd.f32 %v682_v33, %v679_v63  ;;  %v3439_v63 = vld [vmem:[#allocation7 + $0xa0] ss:$16 sps:$4 sm:$0xff]   ;;  %v3443_v33 = vld [vmem:[#allocation7 + $0xa8] ss:$16 sps:$4 sm:$0xff]  }
 0x23c   :  { %3005 = vtanh.f32 %v3333_v34 }
 0x246   :  { %v3006_v39 = vpop.eup %3005 }
 0x247   :  { %v685_v40 = vmul.f32 %v3006_v39, %v678_v38  ;;  %v3455_v38 = vld [vmem:[#allocation7 + $0xc8] ss:$16 sps:$4 sm:$0xff]   ;;  %v3457_v39 = vld [vmem:[#allocation7 + $0xe4] ss:$16 sps:$4 sm:$0xff]  }
 0x249   :  { %687 = vst [vmem:[#allocation9 + $0x2] sm:$0x3] %v685_v40  ;;  %v688_v41 = vpack.c.bf16 %v685_v40, %v685_v40  ;;  %v3460_v40 = vld [vmem:[#allocation7 + $0xec] ss:$16 sps:$4 sm:$0xff]  }
 0x24b   :  { %916 = vmatmul.mubr.bf16.vlgmr.msra.gmra.mrb[8].mxu0 %v688_v41  ;;  %957 = vmatmul.mubr.bf16.vlgmr.msra.gmra.mrb[8].mxu1 %v688_v41  ;;  %v3463_v41 = vld [vmem:[#allocation7 + $0xe0] ss:$16 sps:$4 sm:$0xff]  }
 0x24c   :  { %1205 = vmatpush1.bf16.msra.mxu0 %v3162_v3  ;;  %1246 = vmatpush1.bf16.msra.mxu1 %v3164_v4 }
 0x24d   :  { %1206 = vmatprep.subr.bf16.mxu0 %v3167_v5  ;;  %1247 = vmatprep.subr.bf16.mxu1 %v3171_v6 }
 0x24e   :  { %1236 = vmatprep.mubr.bf16.mxu0 %v3109_v0  ;;  %1277 = vmatprep.mubr.bf16.mxu1 %v3109_v0 }
 0x250   :  { %1207 = vmatpush1.bf16.msra.mxu0 %v3173_v7  ;;  %1248 = vmatpush1.bf16.msra.mxu1 %v3176_v8 }
 0x251   :  { %1208 = vmatprep.subr.bf16.mxu0 %v3179_v9  ;;  %1249 = vmatprep.subr.bf16.mxu1 %v3181_v10 }
 0x254   :  { %1209 = vmatpush1.bf16.msra.mxu0 %v3183_v11  ;;  %1250 = vmatpush1.bf16.msra.mxu1 %v3185_v12 }
 0x255   :  { %1210 = vmatprep.subr.bf16.mxu0 %v3189_v13  ;;  %1251 = vmatprep.subr.bf16.mxu1 %v3193_v14 }
 0x258   :  { %1211 = vmatpush1.bf16.msra.mxu0 %v3195_v15  ;;  %1252 = vmatpush1.bf16.msra.mxu1 %v3199_v16  ;;  %v690_v15 = vld [vmem:[#allocation4 + $0x10] sm:$0xff] }
 0x259   :  { %1212 = vmatprep.subr.bf16.mxu0 %v3201_v17  ;;  %1253 = vmatprep.subr.bf16.mxu1 %v3205_v18 }
 0x25c   :  { %1213 = vmatpush1.bf16.msra.mxu0 %v3207_v19  ;;  %1254 = vmatpush1.bf16.msra.mxu1 %v3209_v20 }
 0x25d   :  { %1214 = vmatprep.subr.bf16.mxu0 %v3213_v21  ;;  %1255 = vmatprep.subr.bf16.mxu1 %v3217_v22 }
 0x260   :  { %1215 = vmatpush1.bf16.msra.mxu0 %v3221_v23  ;;  %1256 = vmatpush1.bf16.msra.mxu1 %v3223_v24 }
 0x261   :  { %1216 = vmatprep.subr.bf16.mxu0 %v3227_v25  ;;  %1257 = vmatprep.subr.bf16.mxu1 %v3229_v26 }
 0x264   :  { %1217 = vmatpush1.bf16.msra.mxu0 %v3231_v27  ;;  %1258 = vmatpush1.bf16.msra.mxu1 %v3233_v28 }
 0x265   :  { %1218 = vmatprep.subr.bf16.mxu0 %v3235_v29  ;;  %1259 = vmatprep.subr.bf16.mxu1 %v3237_v30 }
 0x268   :  { %1219 = vmatpush1.bf16.msra.mxu0 %v3243_v31  ;;  %1260 = vmatpush1.bf16.msra.mxu1 %v3245_v32 }
 0x269   :  { %1525 = vmatprep.subr.bf16.mxu0 %v3378_v44  ;;  %1566 = vmatprep.subr.bf16.mxu1 %v3382_v46 }
 0x31e   :  { %v917_v3 = vpop.f32.mrb[8].mxu0  ;;  %v958_v4 = vpop.f32.mrb[8].mxu1 }
 0x31f   :  { %v919_v5 = vpop.f32.mrb[9].mxu0  ;;  %v960_v6 = vpop.f32.mrb[9].mxu1 }
 0x320   :  { %v969_v7 = vcombine.low %v917_v3, %v919_v5  ;;  %v970_v8 = vcombine.low %v958_v4, %v960_v6  ;;  %v921_v9 = vpop.f32.mrb[10].mxu0  ;;  %v962_v10 = vpop.f32.mrb[10].mxu1  ;;  %v3467_v3 = vld [vmem:[#allocation7 + $0xe8] ss:$16 sps:$4 sm:$0xff]  }
 0x321   :  { %v922_v11 = vpop.f32.mrb[11].mxu0  ;;  %v963_v12 = vpop.f32.mrb[11].mxu1 }
 0x322   :  { %v977_v13 = vrot.slane %v969_v7, %v3289_v42  ;;  %v984_v14 = vrot.slane %v970_v8, %v3289_v42 }
 0x324   :  { %v985_v16 = vcombine.low %v977_v13, %v984_v14 }
 0x326   :  { %v987_v17 = vadd.f32 %v985_v16, %v690_v15  ;;  %v1011_v16 = vld [vmem:[#allocation4 + $0x18] sm:$0xff] }
 0x328   :  { %3007 = vtanh.f32 %v987_v17 }
 0x332   :  { %v3008_v18 = vpop.eup %3007 }
 0x333   :  { %v989_v19 = vadd.f32 1.0, %v3008_v18  ;;  %v992_v20 = vrot.slane %v3008_v18, 2  ;;  %v1001_v24 = vrot.slane %v3008_v18, 4  ;;  %v996_v28 = vrot.slane %v3008_v18, 6 }
 0x335   :  { %v990_v21 = vmul.f32 0.5, %v989_v19  ;;  %v994_v22 = vadd.f32 1.0, %v992_v20  ;;  %v998_v29 = vadd.f32 1.0, %v996_v28 }
 0x337   :  { %v995_v23 = vmul.f32 0.5, %v994_v22  ;;  %v1003_v26 = vmul.f32 %v1001_v24, %v990_v21  ;;  %v999_v30 = vmul.f32 0.5, %v998_v29 }
 0x339   :  { %v1000_v25 = vmul.f32 %v995_v23, %v3333_v34  ;;  %v3445_v34 = vld [vmem:[#allocation7 + $0xc4] ss:$16 sps:$4 sm:$0xff]  }
 0x33b   :  { %v3371_v27 = vadd.f32 %v1003_v26, %v1000_v25 }
 0x33d   :  { %3009 = vtanh.f32 %v3371_v27 }
 0x347   :  { %v3010_v31 = vpop.eup %3009 }
 0x348   :  { %v1006_v32 = vmul.f32 %v3010_v31, %v999_v30 }
 0x34a   :  { %1008 = vst [vmem:[#allocation9 + $0x4] sm:$0x3] %v1006_v32  ;;  %v1009_v35 = vpack.c.bf16 %v1006_v32, %v1006_v32 }
 0x34c   :  { %1237 = vmatmul.mubr.bf16.vlgmr.msra.gmra.mrb[12].mxu0 %v1009_v35  ;;  %1278 = vmatmul.mubr.bf16.vlgmr.msra.gmra.mrb[12].mxu1 %v1009_v35 }
 0x34d   :  { %1557 = vmatprep.mubr.bf16.mxu0 %v3109_v0  ;;  %1598 = vmatprep.mubr.bf16.mxu1 %v3109_v0 }
 0x34e   :  { %1526 = vmatpush1.bf16.msra.mxu0 %v3376_v43  ;;  %1567 = vmatpush1.bf16.msra.mxu1 %v3380_v45 }
 0x34f   :  { %1527 = vmatprep.subr.bf16.mxu0 %v3384_v47  ;;  %1568 = vmatprep.subr.bf16.mxu1 %v3387_v48 }
 0x352   :  { %1528 = vmatpush1.bf16.msra.mxu0 %v3391_v49  ;;  %1569 = vmatpush1.bf16.msra.mxu1 %v3395_v50 }
 0x353   :  { %1529 = vmatprep.subr.bf16.mxu0 %v3397_v51  ;;  %1570 = vmatprep.subr.bf16.mxu1 %v3400_v52 }
 0x356   :  { %1530 = vmatpush1.bf16.msra.mxu0 %v3403_v53  ;;  %1571 = vmatpush1.bf16.msra.mxu1 %v3407_v54 }
 0x357   :  { %1531 = vmatprep.subr.bf16.mxu0 %v3409_v55  ;;  %1572 = vmatprep.subr.bf16.mxu1 %v3412_v56 }
 0x35a   :  { %1532 = vmatpush1.bf16.msra.mxu0 %v3415_v57  ;;  %1573 = vmatpush1.bf16.msra.mxu1 %v3419_v1 }
 0x35b   :  { %1533 = vmatprep.subr.bf16.mxu0 %v3421_v2  ;;  %1574 = vmatprep.subr.bf16.mxu1 %v3424_v58 }
 0x35e   :  { %1534 = vmatpush1.bf16.msra.mxu0 %v3427_v59  ;;  %1575 = vmatpush1.bf16.msra.mxu1 %v3431_v60 }
 0x35f   :  { %1535 = vmatprep.subr.bf16.mxu0 %v3433_v61  ;;  %1576 = vmatprep.subr.bf16.mxu1 %v3436_v62 }
 0x362   :  { %1536 = vmatpush1.bf16.msra.mxu0 %v3439_v63  ;;  %1577 = vmatpush1.bf16.msra.mxu1 %v3443_v33 }
 0x363   :  { %1537 = vmatprep.subr.bf16.mxu0 %v3445_v34  ;;  %1578 = vmatprep.subr.bf16.mxu1 %v3448_v36 }
 0x366   :  { %1538 = vmatpush1.bf16.msra.mxu0 %v3451_v37  ;;  %1579 = vmatpush1.bf16.msra.mxu1 %v3455_v38 }
 0x367   :  { %1539 = vmatprep.subr.bf16.mxu0 %v3457_v39  ;;  %1580 = vmatprep.subr.bf16.mxu1 %v3460_v40 }
 0x36a   :  { %1540 = vmatpush1.bf16.msra.mxu0 %v3463_v41  ;;  %1581 = vmatpush1.bf16.msra.mxu1 %v3467_v3 }
 0x36b   :  { %1846 = vmatprep.subr.bf16.mxu0 %v3378_v44  ;;  %1887 = vmatprep.subr.bf16.mxu1 %v3382_v46 }
 0x41f   :  { %v1238_v4 = vpop.f32.mrb[12].mxu0  ;;  %v1279_v5 = vpop.f32.mrb[12].mxu1 }
 0x420   :  { %v1240_v6 = vpop.f32.mrb[13].mxu0  ;;  %v1281_v7 = vpop.f32.mrb[13].mxu1 }
 0x421   :  { %v1290_v8 = vcombine.low %v1238_v4, %v1240_v6  ;;  %v1291_v9 = vcombine.low %v1279_v5, %v1281_v7  ;;  %v1242_v10 = vpop.f32.mrb[14].mxu0  ;;  %v1283_v11 = vpop.f32.mrb[14].mxu1 }
 0x422   :  { %v1243_v12 = vpop.f32.mrb[15].mxu0  ;;  %v1284_v13 = vpop.f32.mrb[15].mxu1 }
 0x423   :  { %v1298_v14 = vrot.slane %v1290_v8, %v3289_v42  ;;  %v1305_v15 = vrot.slane %v1291_v9, %v3289_v42 }
 0x425   :  { %v1306_v17 = vcombine.low %v1298_v14, %v1305_v15 }
 0x427   :  { %v1308_v18 = vadd.f32 %v1306_v17, %v1011_v16  ;;  %v1332_v17 = vld [vmem:[#allocation4 + $0x20] sm:$0xff] }
 0x429   :  { %3011 = vtanh.f32 %v1308_v18 }
 0x433   :  { %v3012_v19 = vpop.eup %3011 }
 0x434   :  { %v1310_v20 = vadd.f32 1.0, %v3012_v19  ;;  %v1313_v21 = vrot.slane %v3012_v19, 2  ;;  %v1322_v25 = vrot.slane %v3012_v19, 4  ;;  %v1317_v30 = vrot.slane %v3012_v19, 6 }
 0x436   :  { %v1311_v22 = vmul.f32 0.5, %v1310_v20  ;;  %v1315_v23 = vadd.f32 1.0, %v1313_v21  ;;  %v1319_v31 = vadd.f32 1.0, %v1317_v30 }
 0x438   :  { %v1316_v24 = vmul.f32 0.5, %v1315_v23  ;;  %v1324_v28 = vmul.f32 %v1322_v25, %v1311_v22  ;;  %v1320_v32 = vmul.f32 0.5, %v1319_v31 }
 0x43a   :  { %v1321_v26 = vmul.f32 %v1316_v24, %v3371_v27 }
 0x43c   :  { %v3477_v29 = vadd.f32 %v1324_v28, %v1321_v26 }
 0x43e   :  { %3013 = vtanh.f32 %v3477_v29 }
 0x448   :  { %v3014_v35 = vpop.eup %3013 }
 0x449   :  { %v1327_v4 = vmul.f32 %v3014_v35, %v1320_v32 }
 0x44b   :  { %1329 = vst [vmem:[#allocation9 + $0x6] sm:$0x3] %v1327_v4  ;;  %v1330_v5 = vpack.c.bf16 %v1327_v4, %v1327_v4 }
 0x44d   :  { %1558 = vmatmul.mubr.bf16.vlgmr.msra.gmra.mrb[16].mxu0 %v1330_v5  ;;  %1599 = vmatmul.mubr.bf16.vlgmr.msra.gmra.mrb[16].mxu1 %v1330_v5 }
 0x44e   :  { %1847 = vmatpush1.bf16.msra.mxu0 %v3376_v43  ;;  %1888 = vmatpush1.bf16.msra.mxu1 %v3380_v45 }
 0x44f   :  { %1848 = vmatprep.subr.bf16.mxu0 %v3384_v47  ;;  %1889 = vmatprep.subr.bf16.mxu1 %v3387_v48 }
 0x450   :  { %1878 = vmatprep.mubr.bf16.mxu0 %v3109_v0  ;;  %1919 = vmatprep.mubr.bf16.mxu1 %v3109_v0 }
 0x452   :  { %1849 = vmatpush1.bf16.msra.mxu0 %v3391_v49  ;;  %1890 = vmatpush1.bf16.msra.mxu1 %v3395_v50 }
 0x453   :  { %1850 = vmatprep.subr.bf16.mxu0 %v3397_v51  ;;  %1891 = vmatprep.subr.bf16.mxu1 %v3400_v52 }
 0x456   :  { %1851 = vmatpush1.bf16.msra.mxu0 %v3403_v53  ;;  %1892 = vmatpush1.bf16.msra.mxu1 %v3407_v54 }
 0x457   :  { %1852 = vmatprep.subr.bf16.mxu0 %v3409_v55  ;;  %1893 = vmatprep.subr.bf16.mxu1 %v3412_v56 }
 0x45a   :  { %1853 = vmatpush1.bf16.msra.mxu0 %v3415_v57  ;;  %1894 = vmatpush1.bf16.msra.mxu1 %v3419_v1 }
 0x45b   :  { %1854 = vmatprep.subr.bf16.mxu0 %v3421_v2  ;;  %1895 = vmatprep.subr.bf16.mxu1 %v3424_v58 }
 0x45e   :  { %1855 = vmatpush1.bf16.msra.mxu0 %v3427_v59  ;;  %1896 = vmatpush1.bf16.msra.mxu1 %v3431_v60 }
 0x45f   :  { %1856 = vmatprep.subr.bf16.mxu0 %v3433_v61  ;;  %1897 = vmatprep.subr.bf16.mxu1 %v3436_v62 }
 0x462   :  { %1857 = vmatpush1.bf16.msra.mxu0 %v3439_v63  ;;  %1898 = vmatpush1.bf16.msra.mxu1 %v3443_v33 }
 0x463   :  { %1858 = vmatprep.subr.bf16.mxu0 %v3445_v34  ;;  %1899 = vmatprep.subr.bf16.mxu1 %v3448_v36 }
 0x466   :  { %1859 = vmatpush1.bf16.msra.mxu0 %v3451_v37  ;;  %1900 = vmatpush1.bf16.msra.mxu1 %v3455_v38 }
 0x467   :  { %1860 = vmatprep.subr.bf16.mxu0 %v3457_v39  ;;  %1901 = vmatprep.subr.bf16.mxu1 %v3460_v40 }
 0x46a   :  { %1861 = vmatpush1.bf16.msra.mxu0 %v3463_v41  ;;  %1902 = vmatpush1.bf16.msra.mxu1 %v3467_v3 }
 0x46b   :  { %2167 = vmatprep.subr.bf16.mxu0 %v3378_v44  ;;  %2208 = vmatprep.subr.bf16.mxu1 %v3382_v46 }
 0x520   :  { %v1559_v27 = vpop.f32.mrb[16].mxu0  ;;  %v1600_v6 = vpop.f32.mrb[16].mxu1 }
 0x521   :  { %v1561_v7 = vpop.f32.mrb[17].mxu0  ;;  %v1602_v8 = vpop.f32.mrb[17].mxu1 }
 0x522   :  { %v1611_v9 = vcombine.low %v1559_v27, %v1561_v7  ;;  %v1612_v10 = vcombine.low %v1600_v6, %v1602_v8  ;;  %v1563_v11 = vpop.f32.mrb[18].mxu0  ;;  %v1604_v12 = vpop.f32.mrb[18].mxu1 }
 0x523   :  { %v1564_v13 = vpop.f32.mrb[19].mxu0  ;;  %v1605_v14 = vpop.f32.mrb[19].mxu1 }
 0x524   :  { %v1619_v15 = vrot.slane %v1611_v9, %v3289_v42  ;;  %v1626_v16 = vrot.slane %v1612_v10, %v3289_v42 }
 0x526   :  { %v1627_v18 = vcombine.low %v1619_v15, %v1626_v16 }
 0x528   :  { %v1629_v19 = vadd.f32 %v1627_v18, %v1332_v17  ;;  %v1653_v18 = vld [vmem:[#allocation4 + $0x28] sm:$0xff] }
 0x52a   :  { %3015 = vtanh.f32 %v1629_v19 }
 0x534   :  { %v3016_v20 = vpop.eup %3015 }
 0x535   :  { %v1631_v21 = vadd.f32 1.0, %v3016_v20  ;;  %v1634_v22 = vrot.slane %v3016_v20, 2  ;;  %v1643_v26 = vrot.slane %v3016_v20, 4  ;;  %v1638_v32 = vrot.slane %v3016_v20, 6 }
 0x537   :  { %v1632_v23 = vmul.f32 0.5, %v1631_v21  ;;  %v1636_v24 = vadd.f32 1.0, %v1634_v22  ;;  %v1640_v35 = vadd.f32 1.0, %v1638_v32 }
 0x539   :  { %v1637_v25 = vmul.f32 0.5, %v1636_v24  ;;  %v1645_v30 = vmul.f32 %v1643_v26, %v1632_v23  ;;  %v1641_v4 = vmul.f32 0.5, %v1640_v35 }
 0x53b   :  { %v1642_v28 = vmul.f32 %v1637_v25, %v3477_v29 }
 0x53d   :  { %v3517_v31 = vadd.f32 %v1645_v30, %v1642_v28 }
 0x53f   :  { %3017 = vtanh.f32 %v3517_v31 }
 0x549   :  { %v3018_v5 = vpop.eup %3017 }
 0x54a   :  { %v1648_v27 = vmul.f32 %v3018_v5, %v1641_v4 }
 0x54c   :  { %1650 = vst [vmem:[#allocation9 + $0x8] sm:$0x3] %v1648_v27  ;;  %v1651_v6 = vpack.c.bf16 %v1648_v27, %v1648_v27 }
 0x54e   :  { %1879 = vmatmul.mubr.bf16.vlgmr.msra.gmra.mrb[20].mxu0 %v1651_v6  ;;  %1920 = vmatmul.mubr.bf16.vlgmr.msra.gmra.mrb[20].mxu1 %v1651_v6 }
 0x54f   :  { %2168 = vmatpush1.bf16.msra.mxu0 %v3376_v43  ;;  %2209 = vmatpush1.bf16.msra.mxu1 %v3380_v45 }
 0x550   :  { %2169 = vmatprep.subr.bf16.mxu0 %v3384_v47  ;;  %2210 = vmatprep.subr.bf16.mxu1 %v3387_v48 }
 0x551   :  { %2199 = vmatprep.mubr.bf16.mxu0 %v3109_v0  ;;  %2240 = vmatprep.mubr.bf16.mxu1 %v3109_v0 }
 0x553   :  { %2170 = vmatpush1.bf16.msra.mxu0 %v3391_v49  ;;  %2211 = vmatpush1.bf16.msra.mxu1 %v3395_v50 }
 0x554   :  { %2171 = vmatprep.subr.bf16.mxu0 %v3397_v51  ;;  %2212 = vmatprep.subr.bf16.mxu1 %v3400_v52 }
 0x557   :  { %2172 = vmatpush1.bf16.msra.mxu0 %v3403_v53  ;;  %2213 = vmatpush1.bf16.msra.mxu1 %v3407_v54 }
 0x558   :  { %2173 = vmatprep.subr.bf16.mxu0 %v3409_v55  ;;  %2214 = vmatprep.subr.bf16.mxu1 %v3412_v56 }
 0x55b   :  { %2174 = vmatpush1.bf16.msra.mxu0 %v3415_v57  ;;  %2215 = vmatpush1.bf16.msra.mxu1 %v3419_v1 }
 0x55c   :  { %2175 = vmatprep.subr.bf16.mxu0 %v3421_v2  ;;  %2216 = vmatprep.subr.bf16.mxu1 %v3424_v58 }
 0x55f   :  { %2176 = vmatpush1.bf16.msra.mxu0 %v3427_v59  ;;  %2217 = vmatpush1.bf16.msra.mxu1 %v3431_v60 }
 0x560   :  { %2177 = vmatprep.subr.bf16.mxu0 %v3433_v61  ;;  %2218 = vmatprep.subr.bf16.mxu1 %v3436_v62 }
 0x563   :  { %2178 = vmatpush1.bf16.msra.mxu0 %v3439_v63  ;;  %2219 = vmatpush1.bf16.msra.mxu1 %v3443_v33 }
 0x564   :  { %2179 = vmatprep.subr.bf16.mxu0 %v3445_v34  ;;  %2220 = vmatprep.subr.bf16.mxu1 %v3448_v36 }
 0x567   :  { %2180 = vmatpush1.bf16.msra.mxu0 %v3451_v37  ;;  %2221 = vmatpush1.bf16.msra.mxu1 %v3455_v38 }
 0x568   :  { %2181 = vmatprep.subr.bf16.mxu0 %v3457_v39  ;;  %2222 = vmatprep.subr.bf16.mxu1 %v3460_v40 }
 0x56b   :  { %2182 = vmatpush1.bf16.msra.mxu0 %v3463_v41  ;;  %2223 = vmatpush1.bf16.msra.mxu1 %v3467_v3 }
 0x56c   :  { %2488 = vmatprep.subr.bf16.mxu0 %v3378_v44  ;;  %2529 = vmatprep.subr.bf16.mxu1 %v3382_v46 }
 0x621   :  { %v1880_v29 = vpop.f32.mrb[20].mxu0  ;;  %v1921_v7 = vpop.f32.mrb[20].mxu1 }
 0x622   :  { %v1882_v8 = vpop.f32.mrb[21].mxu0  ;;  %v1923_v9 = vpop.f32.mrb[21].mxu1 }
 0x623   :  { %v1932_v10 = vcombine.low %v1880_v29, %v1882_v8  ;;  %v1933_v11 = vcombine.low %v1921_v7, %v1923_v9  ;;  %v1884_v12 = vpop.f32.mrb[22].mxu0  ;;  %v1925_v13 = vpop.f32.mrb[22].mxu1 }
 0x624   :  { %v1885_v14 = vpop.f32.mrb[23].mxu0  ;;  %v1926_v15 = vpop.f32.mrb[23].mxu1 }
 0x625   :  { %v1940_v16 = vrot.slane %v1932_v10, %v3289_v42  ;;  %v1947_v17 = vrot.slane %v1933_v11, %v3289_v42 }
 0x627   :  { %v1948_v19 = vcombine.low %v1940_v16, %v1947_v17  ;;  %v2295_v17 = vld [vmem:[#allocation4 + $0x38] sm:$0xff] }
 0x629   :  { %v1950_v20 = vadd.f32 %v1948_v19, %v1653_v18 }
 0x62b   :  { %3019 = vtanh.f32 %v1950_v20 }
 0x635   :  { %v3020_v44 = vpop.eup %3019 }
 0x636   :  { %v1952_v46 = vadd.f32 1.0, %v3020_v44  ;;  %v1955_v21 = vrot.slane %v3020_v44, 2  ;;  %v1964_v25 = vrot.slane %v3020_v44, 4  ;;  %v1959_v32 = vrot.slane %v3020_v44, 6 }
 0x638   :  { %v1953_v22 = vmul.f32 0.5, %v1952_v46  ;;  %v1957_v23 = vadd.f32 1.0, %v1955_v21  ;;  %v1961_v35 = vadd.f32 1.0, %v1959_v32 }
 0x63a   :  { %v1958_v24 = vmul.f32 0.5, %v1957_v23  ;;  %v1966_v28 = vmul.f32 %v1964_v25, %v1953_v22  ;;  %v1962_v4 = vmul.f32 0.5, %v1961_v35 }
 0x63c   :  { %v1963_v26 = vmul.f32 %v1958_v24, %v3517_v31 }
 0x63e   :  { %v3557_v30 = vadd.f32 %v1966_v28, %v1963_v26 }
 0x640   :  { %3021 = vtanh.f32 %v3557_v30 }
 0x64a   :  { %v3022_v5 = vpop.eup %3021 }
 0x64b   :  { %v1969_v27 = vmul.f32 %v3022_v5, %v1962_v4 }
 0x64d   :  { %1971 = vst [vmem:[#allocation9 + $0xa] sm:$0x3] %v1969_v27  ;;  %v1972_v6 = vpack.c.bf16 %v1969_v27, %v1969_v27 }
 0x64f   :  { %2200 = vmatmul.mubr.bf16.vlgmr.msra.gmra.mrb[24].mxu0 %v1972_v6  ;;  %2241 = vmatmul.mubr.bf16.vlgmr.msra.gmra.mrb[24].mxu1 %v1972_v6 }
 0x650   :  { %2489 = vmatpush1.bf16.msra.mxu0 %v3376_v43  ;;  %2530 = vmatpush1.bf16.msra.mxu1 %v3380_v45 }
 0x651   :  { %2490 = vmatprep.subr.bf16.mxu0 %v3384_v47  ;;  %2531 = vmatprep.subr.bf16.mxu1 %v3387_v48 }
 0x652   :  { %2520 = vmatprep.mubr.bf16.mxu0 %v3109_v0  ;;  %2561 = vmatprep.mubr.bf16.mxu1 %v3109_v0 }
 0x654   :  { %2491 = vmatpush1.bf16.msra.mxu0 %v3391_v49  ;;  %2532 = vmatpush1.bf16.msra.mxu1 %v3395_v50 }
 0x655   :  { %2492 = vmatprep.subr.bf16.mxu0 %v3397_v51  ;;  %2533 = vmatprep.subr.bf16.mxu1 %v3400_v52 }
 0x658   :  { %2493 = vmatpush1.bf16.msra.mxu0 %v3403_v53  ;;  %2534 = vmatpush1.bf16.msra.mxu1 %v3407_v54 }
 0x659   :  { %2494 = vmatprep.subr.bf16.mxu0 %v3409_v55  ;;  %2535 = vmatprep.subr.bf16.mxu1 %v3412_v56  ;;  %v1974_v56 = vld [vmem:[#allocation4 + $0x30] sm:$0xff] }
 0x65c   :  { %2495 = vmatpush1.bf16.msra.mxu0 %v3415_v57  ;;  %2536 = vmatpush1.bf16.msra.mxu1 %v3419_v1 }
 0x65d   :  { %2496 = vmatprep.subr.bf16.mxu0 %v3421_v2  ;;  %2537 = vmatprep.subr.bf16.mxu1 %v3424_v58 }
 0x660   :  { %2497 = vmatpush1.bf16.msra.mxu0 %v3427_v59  ;;  %2538 = vmatpush1.bf16.msra.mxu1 %v3431_v60 }
 0x661   :  { %2498 = vmatprep.subr.bf16.mxu0 %v3433_v61  ;;  %2539 = vmatprep.subr.bf16.mxu1 %v3436_v62 }
 0x664   :  { %2499 = vmatpush1.bf16.msra.mxu0 %v3439_v63  ;;  %2540 = vmatpush1.bf16.msra.mxu1 %v3443_v33 }
 0x665   :  { %2500 = vmatprep.subr.bf16.mxu0 %v3445_v34  ;;  %2541 = vmatprep.subr.bf16.mxu1 %v3448_v36 }
 0x668   :  { %2501 = vmatpush1.bf16.msra.mxu0 %v3451_v37  ;;  %2542 = vmatpush1.bf16.msra.mxu1 %v3455_v38 }
 0x669   :  { %2502 = vmatprep.subr.bf16.mxu0 %v3457_v39  ;;  %2543 = vmatprep.subr.bf16.mxu1 %v3460_v40 }
 0x66c   :  { %2503 = vmatpush1.bf16.msra.mxu0 %v3463_v41  ;;  %2544 = vmatpush1.bf16.msra.mxu1 %v3467_v3 }
 0x722   :  { %v2201_v0 = vpop.f32.mrb[24].mxu0  ;;  %v2242_v43 = vpop.f32.mrb[24].mxu1 }
 0x723   :  { %v2203_v45 = vpop.f32.mrb[25].mxu0  ;;  %v2244_v47 = vpop.f32.mrb[25].mxu1 }
 0x724   :  { %v2253_v48 = vcombine.low %v2201_v0, %v2203_v45  ;;  %v2254_v49 = vcombine.low %v2242_v43, %v2244_v47  ;;  %v2205_v50 = vpop.f32.mrb[26].mxu0  ;;  %v2246_v51 = vpop.f32.mrb[26].mxu1 }
 0x725   :  { %v2206_v52 = vpop.f32.mrb[27].mxu0  ;;  %v2247_v53 = vpop.f32.mrb[27].mxu1 }
 0x726   :  { %v2261_v54 = vrot.slane %v2253_v48, %v3289_v42  ;;  %v2268_v55 = vrot.slane %v2254_v49, %v3289_v42 }
 0x728   :  { %v2269_v57 = vcombine.low %v2261_v54, %v2268_v55 }
 0x72a   :  { %v2271_v1 = vadd.f32 %v2269_v57, %v1974_v56 }
 0x72c   :  { %3023 = vtanh.f32 %v2271_v1 }
 0x736   :  { %v3024_v2 = vpop.eup %3023 }
 0x737   :  { %v2273_v58 = vadd.f32 1.0, %v3024_v2  ;;  %v2276_v59 = vrot.slane %v3024_v2, 2  ;;  %v2285_v63 = vrot.slane %v3024_v2, 4  ;;  %v2280_v37 = vrot.slane %v3024_v2, 6 }
 0x739   :  { %v2274_v60 = vmul.f32 0.5, %v2273_v58  ;;  %v2278_v61 = vadd.f32 1.0, %v2276_v59  ;;  %v2282_v38 = vadd.f32 1.0, %v2280_v37 }
 0x73b   :  { %v2279_v62 = vmul.f32 0.5, %v2278_v61  ;;  %v2287_v34 = vmul.f32 %v2285_v63, %v2274_v60  ;;  %v2283_v39 = vmul.f32 0.5, %v2282_v38 }
 0x73d   :  { %v2284_v33 = vmul.f32 %v2279_v62, %v3557_v30 }
 0x73f   :  { %v2288_v36 = vadd.f32 %v2287_v34, %v2284_v33 }
 0x741   :  { %3025 = vtanh.f32 %v2288_v36 }
 0x74b   :  { %v3026_v40 = vpop.eup %3025 }
 0x74c   :  { %v2290_v41 = vmul.f32 %v3026_v40, %v2283_v39 }
 0x74e   :  { %2292 = vst [vmem:[#allocation9 + $0xc] sm:$0x3] %v2290_v41  ;;  %v2293_v3 = vpack.c.bf16 %v2290_v41, %v2290_v41 }
 0x750   :  { %2521 = vmatmul.mubr.bf16.vlgmr.msra.gmra.mrb[28].mxu0 %v2293_v3  ;;  %2562 = vmatmul.mubr.bf16.vlgmr.msra.gmra.mrb[28].mxu1 %v2293_v3 }
 0x823   :  { %v2522_v31 = vpop.f32.mrb[28].mxu0  ;;  %v2563_v29 = vpop.f32.mrb[28].mxu1 }
 0x824   :  { %v2524_v7 = vpop.f32.mrb[29].mxu0  ;;  %v2565_v8 = vpop.f32.mrb[29].mxu1 }
 0x825   :  { %v2574_v9 = vcombine.low %v2522_v31, %v2524_v7  ;;  %v2575_v10 = vcombine.low %v2563_v29, %v2565_v8  ;;  %v2526_v11 = vpop.f32.mrb[30].mxu0  ;;  %v2567_v12 = vpop.f32.mrb[30].mxu1 }
 0x826   :  { %v2527_v13 = vpop.f32.mrb[31].mxu0  ;;  %v2568_v14 = vpop.f32.mrb[31].mxu1 }
 0x827   :  { %v2582_v15 = vrot.slane %v2574_v9, %v3289_v42  ;;  %v2589_v16 = vrot.slane %v2575_v10, %v3289_v42 }
 0x829   :  { %v2590_v18 = vcombine.low %v2582_v15, %v2589_v16 }
 0x82b   :  { %v2592_v19 = vadd.f32 %v2590_v18, %v2295_v17 }
 0x82d   :  { %3027 = vtanh.f32 %v2592_v19 }
 0x837   :  { %v3028_v20 = vpop.eup %3027 }
 0x838   :  { %v2594_v44 = vadd.f32 1.0, %v3028_v20  ;;  %v2597_v46 = vrot.slane %v3028_v20, 2  ;;  %v2606_v24 = vrot.slane %v3028_v20, 4  ;;  %v2601_v30 = vrot.slane %v3028_v20, 6 }
 0x83a   :  { %v2595_v21 = vmul.f32 0.5, %v2594_v44  ;;  %v2599_v22 = vadd.f32 1.0, %v2597_v46  ;;  %v2603_v32 = vadd.f32 1.0, %v2601_v30 }
 0x83c   :  { %v2600_v23 = vmul.f32 0.5, %v2599_v22  ;;  %v2608_v26 = vmul.f32 %v2606_v24, %v2595_v21  ;;  %v2604_v42 = vmul.f32 0.5, %v2603_v32 }
 0x83e   :  { %v2605_v25 = vmul.f32 %v2600_v23, %v2288_v36 }
 0x840   :  { %v2609_v28 = vadd.f32 %v2608_v26, %v2605_v25 }
 0x842   :  { %3029 = vtanh.f32 %v2609_v28  ;;  %2616 = vst [vmem:[#allocation3] sm:$0x3] %v2609_v28 }
 0x84c   :  { %v3030_v35 = vpop.eup %3029 }
 0x84d   :  { %v2611_v4 = vmul.f32 %v3030_v35, %v2604_v42 }
 0x84f   :  { %2613 = vst [vmem:[#allocation9 + $0xe] sm:$0x3] %v2611_v4  ;;  %v2614_v5 = vpack.c.bf16 %v2611_v4, %v2611_v4 }
 0x850   :  { %3086 = shalt.err (!%p3083_p6)
}
 0x851   :  { %s3087_s12 = scalar_lea.hbm %s3611_s2, 256 }
 0x852   :  { %p3088_p7 = scmp.ne.s32.totalorder %s3611_s2, %s3087_s12  ;;  %p3091_p8 = scmp.lt.u32.totalorder %s3087_s12, %s3611_s2 }
 0x854   :  { %p3093_p9 = pnand %p3091_p8, %p3088_p7 }
 0x856   :  { %3096 = shalt.err (!%p3093_p9)
}
 0x857   :  { %s3113_s17 = smov 32   ;;  %s3114_s18 = smov 2   ;;  %2615 = vst [vmem:[#allocation2] sm:$0x1] %v2614_v5 }
 0x858   :  { %2628 = dma.vmem_to_hbm [thread:$0]  %s2623_s8, 256, %s3611_s2, [#allocation6], %s3113_s17, %s3113_s17, %s3114_s18  }
 0x859   :  { %3101 = dma.done.wait [#allocation6], 256  }
 0x85a   :  { %3102 = vsyncadd [#allocation6], 4294967040 }
 0x85b   :  { %2632 = vsyncpa [#allocation5], 1 }
 0x85c   :  { %2633 = vsyncpa [#allocation8], 1 }
 0x85d   :  { %2634 = vsyncpa [#allocation6], 1 }

</bundles_post_ra>
